<compile_context>
chip_gen: v7x
topology: tpu7x:2x2x1
jax: 0.10.0
libtpu: 0.0.40
codegen_flags: <defaults>
</compile_context>

<pallas_src>
import functools

import jax
import jax.numpy as jnp
from jax.experimental import pallas as pl
from jax.experimental.pallas import tpu as pltpu


def _ceil_to(x, m):
    return -(-x // m) * m


def _mmoe_kernel(x_ref, w_ref, tile_ref, sel_ref, out_ref, *, num_tasks,
                 num_experts, ed_pad, approx_softmax):
    """One batch tile.

    x_ref:    [Bt, K]                 (possibly bf16)
    w_ref:    [K, Nw]                 fused expert+gate weight (possibly bf16)
    tile_ref: [E, ED_pad]             tile[e, d*E+e] = 1 (f32 constant)
    sel_ref:  [T*ED_pad, N_out]       block-diag selector (f32 constant)
    out_ref:  [Bt, N_out]             lane-dense output slab, col t*D + d
    """
    T, E = num_tasks, num_experts

    # Single fused MXU matmul: expert slab + all task gate logits, f32 accum.
    fused = jnp.dot(x_ref[...], w_ref[...],
                    preferred_element_type=jnp.float32)        # [Bt, Nw]

    expert_slab = fused[:, :ed_pad]                            # lane-aligned
    tile_mat = tile_ref[...]                                   # [E, ED_pad]

    weighted = []
    for t in range(T):  # T is small and static -> unrolled
        logits = fused[:, ed_pad + t * E: ed_pad + (t + 1) * E]   # [Bt, E]
        m = jnp.max(logits, axis=1, keepdims=True)
        ex = jnp.exp(logits - m)
        denom = jnp.sum(ex, axis=1, keepdims=True)
        if approx_softmax:
            gate = ex * pl.reciprocal(denom, approx=True)      # EUP slot
        else:
            gate = ex / denom
        # Constant MXU broadcast of the gate across the output dim:
        # gate_tiled[:, d*E+e] = gate[:, e]  (zero in the ED..ED_pad padding).
        gate_tiled = jnp.dot(gate, tile_mat,
                             preferred_element_type=jnp.float32)  # [Bt, ED_pad]
        weighted.append(expert_slab * gate_tiled)                 # VPU

    # Lane-concat of lane-aligned ED_pad-wide slabs, then ONE block-diagonal
    # selector matmul producing the whole (lane-dense, >=128-wide) output tile.
    weighted_all = weighted[0] if T == 1 else jnp.concatenate(weighted, axis=1)
    out_ref[...] = jnp.dot(weighted_all, sel_ref[...],
                           preferred_element_type=jnp.float32).astype(out_ref.dtype)


def mmoe_forward(inputs, expert_kernel, gate_kernels, *, num_experts,
                 output_dim, block_b=512, compute_dtype=jnp.float32,
                 out_dtype=jnp.float32, approx_softmax=True):
    """MMOE forward.

    inputs:        [B, K] f32
    expert_kernel: [K, E*D] f32 (PyTorch layout, column = d*E + e)
    gate_kernels:  [T, K, E] f32
    Returns [T, B, D] in out_dtype (task-major stack of per-task outputs).

    block_b:       batch tile; forced to a multiple of 8 and capped by the VMEM
                   budget.  512-1024 recommended (HBM-bound streaming regime).
    compute_dtype: bf16 recommended on v5e/v6e/v7x for the matmul inputs (f32
                   accumulation); f32 for closest-to-reference numerics.
    out_dtype:     bf16 halves the output HBM traffic when downstream allows.
    approx_softmax: use the approximate EUP reciprocal in the gate softmax.
    """
    B, K = inputs.shape
    T = gate_kernels.shape[0]
    E, D = num_experts, output_dim
    ED = E * D
    ED_pad = _ceil_to(max(ED, 1), 128)             # lane-align expert/gate boundary
    Nw = _ceil_to(ED_pad + T * E, 256)             # full-width MXU passes
    N_out = _ceil_to(max(T * D, 1), 128)           # lane-dense store

    # ---- weight / constant plumbing (precomputed once in a real model) ------
    gate_flat = jnp.transpose(gate_kernels, (1, 0, 2)).reshape(K, T * E)
    w_fused = jnp.zeros((K, Nw), jnp.float32)
    w_fused = w_fused.at[:, :ED].set(expert_kernel)
    w_fused = w_fused.at[:, ED_pad:ED_pad + T * E].set(gate_flat)
    w_fused = w_fused.astype(compute_dtype)

    # tile_mat[e, d*E+e] = 1 for d < D (broadcast gate across output dim).
    cols = jnp.arange(ED_pad, dtype=jnp.int32)
    tile_mat = (((cols[None, :] % E) == jnp.arange(E, dtype=jnp.int32)[:, None])
                & (cols[None, :] < ED)).astype(jnp.float32)        # [E, ED_pad]

    # Block-diag selector: sel[t*ED_pad + d*E + e, t*D + d] = 1.
    rows = jnp.arange(T * ED_pad, dtype=jnp.int32)
    t_idx, j_idx = rows // ED_pad, rows % ED_pad
    col_idx = t_idx * D + j_idx // E
    valid = j_idx < ED
    sel = ((col_idx[:, None] == jnp.arange(N_out, dtype=jnp.int32)[None, :])
           & valid[:, None]).astype(jnp.float32)           # [T*ED_pad, N_out]

    # ---- VMEM budget (generation-aware) -------------------------------------
    try:
        vmem_cap = int(getattr(pltpu.get_tpu_info(), "vmem_capacity_bytes",
                               128 << 20))
    except Exception:
        vmem_cap = 128 << 20
    vmem_limit = int(0.75 * vmem_cap)   # ~96 MiB v5e/v6e, ~48 MiB v7x

    comp_sz = jnp.dtype(compute_dtype).itemsize
    out_sz = jnp.dtype(out_dtype).itemsize
    resident = K * Nw * comp_sz + E * ED_pad * 4 + T * ED_pad * N_out * 4
    per_row = (2 * K * comp_sz                       # x (double-buffered)
               + 2 * N_out * out_sz                  # out (double-buffered)
               + 4 * (Nw + (T + 2) * ED_pad + N_out))  # f32 intermediates
    budget = int(0.8 * vmem_limit) - resident
    cap = max(8, (budget // per_row) // 8 * 8) if budget > 8 * per_row else 8

    # ---- batch tiling (Bt forced to a multiple of 8) ------------------------
    Bt = max(8, (min(block_b, _ceil_to(B, 8)) // 8) * 8)
    Bt = min(Bt, cap)
    grid_b = -(-B // Bt)
    B_pad = grid_b * Bt
    x = inputs.astype(compute_dtype)
    if B_pad != B:
        x = jnp.pad(x, ((0, B_pad - B), (0, 0)))   # zero rows; sliced off below

    kernel = functools.partial(_mmoe_kernel, num_tasks=T, num_experts=E,
                               ed_pad=ED_pad, approx_softmax=approx_softmax)

    def _invariant_spec(shape, single_buffer):
        if single_buffer:
            return pl.BlockSpec(shape, lambda i: (0,) * len(shape),
                                pipeline_mode=pl.Buffered(1))
        return pl.BlockSpec(shape, lambda i: (0,) * len(shape))

    def _run(single_buffer):
        grid_spec = pltpu.PrefetchScalarGridSpec(
            num_scalar_prefetch=0,
            grid=(grid_b,),
            in_specs=[
                pl.BlockSpec((Bt, K), lambda i: (i, 0)),            # x stream
                _invariant_spec((K, Nw), single_buffer),            # resident
                _invariant_spec((E, ED_pad), single_buffer),        # resident
                _invariant_spec((T * ED_pad, N_out), single_buffer),
            ],
            out_specs=pl.BlockSpec((Bt, N_out), lambda i: (i, 0)),
        )
        return pl.pallas_call(
            kernel,
            out_shape=jax.ShapeDtypeStruct((B_pad, N_out), out_dtype),
            grid_spec=grid_spec,
            compiler_params=pltpu.CompilerParams(
                dimension_semantics=("parallel",),
                vmem_limit_bytes=vmem_limit,
            ),
        )(x, w_fused, tile_mat, sel)

    try:
        out_slab = _run(single_buffer=True)
    except Exception:
        # Fallback if Buffered(1) is rejected by this Pallas version.
        out_slab = _run(single_buffer=False)

    # [B_pad, N_out] -> [T, B, D]  (layout glue only; kernel store stays dense)
    return out_slab[:B, :T * D].reshape(B, T, D).transpose(1, 0, 2)


def mmoe_reference(inputs, expert_kernel, gate_kernels, *, num_experts,
                   output_dim):
    """Pure-JAX reference matching the PyTorch forward exactly."""
    expert_out = inputs @ expert_kernel                              # [B, E*D]
    expert_out = expert_out.reshape(-1, output_dim, num_experts)     # [B, D, E]
    outs = []
    for t in range(gate_kernels.shape[0]):
        gate = jax.nn.softmax(inputs @ gate_kernels[t], axis=1)      # [B, E]
        outs.append(jnp.sum(expert_out * gate[:, None, :], axis=2))  # [B, D]
    return jnp.stack(outs, axis=0)                                   # [T, B, D]


if __name__ == "__main__":
    # Small, deterministic problem sizes (block_b=16 -> 4-step grid).
    B = 64           # batch
    K = 32           # input_dim
    E = 4            # num_experts
    D = 16           # output_dim
    T = 2            # num_tasks

    key = jax.random.PRNGKey(0)
    k_x, k_w, k_g = jax.random.split(key, 3)

    inputs = jax.random.normal(k_x, (B, K), dtype=jnp.float32)
    expert_kernel = jax.random.normal(k_w, (K, E * D), dtype=jnp.float32)
    gate_kernels = jax.random.normal(k_g, (T, K, E), dtype=jnp.float32)

    # f32 path with exact softmax division — multi-tile grid.
    out = mmoe_forward(inputs, expert_kernel, gate_kernels,
                       num_experts=E, output_dim=D, block_b=16,
                       approx_softmax=False)
    out = jax.block_until_ready(out)
    ref = mmoe_reference(inputs, expert_kernel, gate_kernels,
                         num_experts=E, output_dim=D)
    assert out.shape == (T, B, D)
    assert jnp.allclose(out, ref, atol=2e-2, rtol=2e-2), "f32 mismatch vs reference"

    # bf16 matmul-input path (recommended on all generations), default block_b,
    # approximate EUP reciprocal in the softmax.
    out_bf16 = mmoe_forward(inputs, expert_kernel, gate_kernels,
                            num_experts=E, output_dim=D,
                            compute_dtype=jnp.bfloat16)
    out_bf16 = jax.block_until_ready(out_bf16)
    rnd = lambda a: a.astype(jnp.bfloat16).astype(jnp.float32)
    ref_bf16 = mmoe_reference(rnd(inputs), rnd(expert_kernel), rnd(gate_kernels),
                              num_experts=E, output_dim=D)
    assert jnp.allclose(out_bf16, ref_bf16, atol=5e-2, rtol=5e-2), "bf16 mismatch"

    print("KERNEL_OK")
</pallas_src>

<mosaic_0001>
module attributes {stable_mosaic.version = 11 : i64} {
  func.func @_mmoe_kernel(%arg0: i32, %arg1: memref<16x32xf32, #tpu.memory_space<vmem>>, %arg2: memref<32x256xf32, #tpu.memory_space<vmem>>, %arg3: memref<4x128xf32, #tpu.memory_space<vmem>>, %arg4: memref<256x128xf32, #tpu.memory_space<vmem>>, %arg5: memref<16x128xf32, #tpu.memory_space<vmem>>) attributes {dimension_semantics = [#tpu.dimension_semantics<parallel>], iteration_bounds = array<i64: 4>, scalar_prefetch = 0 : i64, scratch_operands = 0 : i64, tpu.core_type = #tpu.core_type<tc>, window_params = [{transform_indices = @transform_0, window_bounds = array<i64: 16, 32>}, {pipeline_mode = #tpu.pipeline_mode<synchronous>, transform_indices = @transform_1, window_bounds = array<i64: 32, 256>}, {pipeline_mode = #tpu.pipeline_mode<synchronous>, transform_indices = @transform_2, window_bounds = array<i64: 4, 128>}, {pipeline_mode = #tpu.pipeline_mode<synchronous>, transform_indices = @transform_3, window_bounds = array<i64: 256, 128>}, {transform_indices = @transform_4, window_bounds = array<i64: 16, 128>}]} {
    %c0 = arith.constant 0 : index
    %c0_0 = arith.constant 0 : index
    %0 = vector.load %arg1[%c0, %c0_0] : memref<16x32xf32, #tpu.memory_space<vmem>>, vector<16x32xf32>
    %c0_1 = arith.constant 0 : index
    %c0_2 = arith.constant 0 : index
    %1 = vector.load %arg2[%c0_1, %c0_2] : memref<32x256xf32, #tpu.memory_space<vmem>>, vector<32x256xf32>
    %cst = arith.constant dense<0.000000e+00> : vector<16x256xf32>
    %2 = tpu.matmul %0, %1, %cst {dimension_numbers = #tpu.dot_dimension_numbers<[1], [0], [0], [1], [0, 0, 1, 1], [], []>} : vector<16x32xf32>, vector<32x256xf32>, vector<16x256xf32> -> vector<16x256xf32>
    %3 = vector.extract_strided_slice %2 {offsets = [0, 0], sizes = [16, 128], strides = [1, 1]} : vector<16x256xf32> to vector<16x128xf32>
    %c0_3 = arith.constant 0 : index
    %c0_4 = arith.constant 0 : index
    %4 = vector.load %arg3[%c0_3, %c0_4] : memref<4x128xf32, #tpu.memory_space<vmem>>, vector<4x128xf32>
    %5 = vector.extract_strided_slice %2 {offsets = [0, 128], sizes = [16, 4], strides = [1, 1]} : vector<16x256xf32> to vector<16x4xf32>
    %cst_5 = arith.constant dense<0xFF800000> : vector<16xf32>
    %6 = vector.multi_reduction <maximumf>, %5, %cst_5 [1] : vector<16x4xf32> to vector<16xf32>
    %7 = vector.shape_cast %6 : vector<16xf32> to vector<16x1xf32>
    %8 = vector.broadcast %7 : vector<16x1xf32> to vector<16x4xf32>
    %9 = arith.subf %5, %8 : vector<16x4xf32>
    %10 = math.exp %9 : vector<16x4xf32>
    %cst_6 = arith.constant dense<0.000000e+00> : vector<16xf32>
    %11 = vector.multi_reduction <add>, %10, %cst_6 [1] : vector<16x4xf32> to vector<16xf32>
    %12 = vector.shape_cast %11 : vector<16xf32> to vector<16x1xf32>
    %13 = vector.broadcast %12 : vector<16x1xf32> to vector<16x4xf32>
    %14 = arith.divf %10, %13 : vector<16x4xf32>
    %cst_7 = arith.constant dense<0.000000e+00> : vector<16x128xf32>
    %15 = tpu.matmul %14, %4, %cst_7 {dimension_numbers = #tpu.dot_dimension_numbers<[1], [0], [0], [1], [0, 0, 1, 1], [], []>} : vector<16x4xf32>, vector<4x128xf32>, vector<16x128xf32> -> vector<16x128xf32>
    %16 = arith.mulf %3, %15 : vector<16x128xf32>
    %17 = vector.extract_strided_slice %2 {offsets = [0, 132], sizes = [16, 4], strides = [1, 1]} : vector<16x256xf32> to vector<16x4xf32>
    %cst_8 = arith.constant dense<0xFF800000> : vector<16xf32>
    %18 = vector.multi_reduction <maximumf>, %17, %cst_8 [1] : vector<16x4xf32> to vector<16xf32>
    %19 = vector.shape_cast %18 : vector<16xf32> to vector<16x1xf32>
    %20 = vector.broadcast %19 : vector<16x1xf32> to vector<16x4xf32>
    %21 = arith.subf %17, %20 : vector<16x4xf32>
    %22 = math.exp %21 : vector<16x4xf32>
    %cst_9 = arith.constant dense<0.000000e+00> : vector<16xf32>
    %23 = vector.multi_reduction <add>, %22, %cst_9 [1] : vector<16x4xf32> to vector<16xf32>
    %24 = vector.shape_cast %23 : vector<16xf32> to vector<16x1xf32>
    %25 = vector.broadcast %24 : vector<16x1xf32> to vector<16x4xf32>
    %26 = arith.divf %22, %25 : vector<16x4xf32>
    %cst_10 = arith.constant dense<0.000000e+00> : vector<16x128xf32>
    %27 = tpu.matmul %26, %4, %cst_10 {dimension_numbers = #tpu.dot_dimension_numbers<[1], [0], [0], [1], [0, 0, 1, 1], [], []>} : vector<16x4xf32>, vector<4x128xf32>, vector<16x128xf32> -> vector<16x128xf32>
    %28 = arith.mulf %3, %27 : vector<16x128xf32>
    %29 = tpu.concatenate %16, %28 in 1 : vector<16x128xf32>, vector<16x128xf32> -> vector<16x256xf32>
    %c0_11 = arith.constant 0 : index
    %c0_12 = arith.constant 0 : index
    %30 = vector.load %arg4[%c0_11, %c0_12] : memref<256x128xf32, #tpu.memory_space<vmem>>, vector<256x128xf32>
    %cst_13 = arith.constant dense<0.000000e+00> : vector<16x128xf32>
    %31 = tpu.matmul %29, %30, %cst_13 {dimension_numbers = #tpu.dot_dimension_numbers<[1], [0], [0], [1], [0, 0, 1, 1], [], []>} : vector<16x256xf32>, vector<256x128xf32>, vector<16x128xf32> -> vector<16x128xf32>
    %c0_14 = arith.constant 0 : index
    %c0_15 = arith.constant 0 : index
    %32 = vector.load %arg5[%c0_14, %c0_15] : memref<16x128xf32, #tpu.memory_space<vmem>>, vector<16x128xf32>
    tpu.vector_store %arg5[%c0_14, %c0_15], %31 {strides = array<i32>} : memref<16x128xf32, #tpu.memory_space<vmem>>, vector<16x128xf32>,
    return
  }
  func.func @transform_0(%arg0: i32) -> (i32, i32) {
    %c0_i32 = arith.constant 0 : i32
    %c0_i32_0 = arith.constant 0 : i32
    return %arg0, %c0_i32 : i32, i32
  }
  func.func @transform_1(%arg0: i32) -> (i32, i32) {
    %c0_i32 = arith.constant 0 : i32
    %c0_i32_0 = arith.constant 0 : i32
    %c0_i32_1 = arith.constant 0 : i32
    return %c0_i32, %c0_i32_0 : i32, i32
  }
  func.func @transform_2(%arg0: i32) -> (i32, i32) {
    %c0_i32 = arith.constant 0 : i32
    %c0_i32_0 = arith.constant 0 : i32
    %c0_i32_1 = arith.constant 0 : i32
    return %c0_i32, %c0_i32_0 : i32, i32
  }
  func.func @transform_3(%arg0: i32) -> (i32, i32) {
    %c0_i32 = arith.constant 0 : i32
    %c0_i32_0 = arith.constant 0 : i32
    %c0_i32_1 = arith.constant 0 : i32
    return %c0_i32, %c0_i32_0 : i32, i32
  }
  func.func @transform_4(%arg0: i32) -> (i32, i32) {
    %c0_i32 = arith.constant 0 : i32
    %c0_i32_0 = arith.constant 0 : i32
    return %arg0, %c0_i32 : i32, i32
  }
}

module attributes {stable_mosaic.version = 11 : i64} {
  func.func @_mmoe_kernel(%arg0: i32, %arg1: memref<16x32xf32, #tpu.memory_space<vmem>>, %arg2: memref<32x256xf32, #tpu.memory_space<vmem>>, %arg3: memref<4x128xf32, #tpu.memory_space<vmem>>, %arg4: memref<256x128xf32, #tpu.memory_space<vmem>>, %arg5: memref<16x128xf32, #tpu.memory_space<vmem>>) attributes {dimension_semantics = [#tpu.dimension_semantics<parallel>], iteration_bounds = array<i64: 4>, scalar_prefetch = 0 : i64, scratch_operands = 0 : i64, tpu.core_type = #tpu.core_type<tc>, window_params = [{transform_indices = @transform_0, window_bounds = array<i64: 16, 32>}, {pipeline_mode = #tpu.pipeline_mode<synchronous>, transform_indices = @transform_1, window_bounds = array<i64: 32, 256>}, {pipeline_mode = #tpu.pipeline_mode<synchronous>, transform_indices = @transform_2, window_bounds = array<i64: 4, 128>}, {pipeline_mode = #tpu.pipeline_mode<synchronous>, transform_indices = @transform_3, window_bounds = array<i64: 256, 128>}, {transform_indices = @transform_4, window_bounds = array<i64: 16, 128>}]} {
    %c0 = arith.constant 0 : index
    %c0_0 = arith.constant 0 : index
    %0 = vector.load %arg1[%c0, %c0_0] : memref<16x32xf32, #tpu.memory_space<vmem>>, vector<16x32xf32>
    %c0_1 = arith.constant 0 : index
    %c0_2 = arith.constant 0 : index
    %1 = vector.load %arg2[%c0_1, %c0_2] : memref<32x256xf32, #tpu.memory_space<vmem>>, vector<32x256xf32>
    %cst = arith.constant dense<0.000000e+00> : vector<16x256xf32>
    %2 = tpu.matmul %0, %1, %cst {dimension_numbers = #tpu.dot_dimension_numbers<[1], [0], [0], [1], [0, 0, 1, 1], [], []>} : vector<16x32xf32>, vector<32x256xf32>, vector<16x256xf32> -> vector<16x256xf32>
    %3 = vector.extract_strided_slice %2 {offsets = [0, 0], sizes = [16, 128], strides = [1, 1]} : vector<16x256xf32> to vector<16x128xf32>
    %c0_3 = arith.constant 0 : index
    %c0_4 = arith.constant 0 : index
    %4 = vector.load %arg3[%c0_3, %c0_4] : memref<4x128xf32, #tpu.memory_space<vmem>>, vector<4x128xf32>
    %5 = vector.extract_strided_slice %2 {offsets = [0, 128], sizes = [16, 4], strides = [1, 1]} : vector<16x256xf32> to vector<16x4xf32>
    %cst_5 = arith.constant dense<0xFF800000> : vector<16xf32>
    %6 = vector.multi_reduction <maximumf>, %5, %cst_5 [1] : vector<16x4xf32> to vector<16xf32>
    %7 = vector.shape_cast %6 : vector<16xf32> to vector<16x1xf32>
    %8 = vector.broadcast %7 : vector<16x1xf32> to vector<16x4xf32>
    %9 = arith.subf %5, %8 : vector<16x4xf32>
    %10 = math.exp %9 : vector<16x4xf32>
    %cst_6 = arith.constant dense<0.000000e+00> : vector<16xf32>
    %11 = vector.multi_reduction <add>, %10, %cst_6 [1] : vector<16x4xf32> to vector<16xf32>
    %12 = vector.shape_cast %11 : vector<16xf32> to vector<16x1xf32>
    %13 = vector.broadcast %12 : vector<16x1xf32> to vector<16x4xf32>
    %14 = arith.divf %10, %13 : vector<16x4xf32>
    %cst_7 = arith.constant dense<0.000000e+00> : vector<16x128xf32>
    %15 = tpu.matmul %14, %4, %cst_7 {dimension_numbers = #tpu.dot_dimension_numbers<[1], [0], [0], [1], [0, 0, 1, 1], [], []>} : vector<16x4xf32>, vector<4x128xf32>, vector<16x128xf32> -> vector<16x128xf32>
    %16 = arith.mulf %3, %15 : vector<16x128xf32>
    %17 = vector.extract_strided_slice %2 {offsets = [0, 132], sizes = [16, 4], strides = [1, 1]} : vector<16x256xf32> to vector<16x4xf32>
    %cst_8 = arith.constant dense<0xFF800000> : vector<16xf32>
    %18 = vector.multi_reduction <maximumf>, %17, %cst_8 [1] : vector<16x4xf32> to vector<16xf32>
    %19 = vector.shape_cast %18 : vector<16xf32> to vector<16x1xf32>
    %20 = vector.broadcast %19 : vector<16x1xf32> to vector<16x4xf32>
    %21 = arith.subf %17, %20 : vector<16x4xf32>
    %22 = math.exp %21 : vector<16x4xf32>
    %cst_9 = arith.constant dense<0.000000e+00> : vector<16xf32>
    %23 = vector.multi_reduction <add>, %22, %cst_9 [1] : vector<16x4xf32> to vector<16xf32>
    %24 = vector.shape_cast %23 : vector<16xf32> to vector<16x1xf32>
    %25 = vector.broadcast %24 : vector<16x1xf32> to vector<16x4xf32>
    %26 = arith.divf %22, %25 : vector<16x4xf32>
    %cst_10 = arith.constant dense<0.000000e+00> : vector<16x128xf32>
    %27 = tpu.matmul %26, %4, %cst_10 {dimension_numbers = #tpu.dot_dimension_numbers<[1], [0], [0], [1], [0, 0, 1, 1], [], []>} : vector<16x4xf32>, vector<4x128xf32>, vector<16x128xf32> -> vector<16x128xf32>
    %28 = arith.mulf %3, %27 : vector<16x128xf32>
    %29 = tpu.concatenate %16, %28 in 1 : vector<16x128xf32>, vector<16x128xf32> -> vector<16x256xf32>
    %c0_11 = arith.constant 0 : index
    %c0_12 = arith.constant 0 : index
    %30 = vector.load %arg4[%c0_11, %c0_12] : memref<256x128xf32, #tpu.memory_space<vmem>>, vector<256x128xf32>
    %cst_13 = arith.constant dense<0.000000e+00> : vector<16x128xf32>
    %31 = tpu.matmul %29, %30, %cst_13 {dimension_numbers = #tpu.dot_dimension_numbers<[1], [0], [0], [1], [0, 0, 1, 1], [], []>} : vector<16x256xf32>, vector<256x128xf32>, vector<16x128xf32> -> vector<16x128xf32>
    %c0_14 = arith.constant 0 : index
    %c0_15 = arith.constant 0 : index
    %32 = vector.load %arg5[%c0_14, %c0_15] : memref<16x128xf32, #tpu.memory_space<vmem>>, vector<16x128xf32>
    tpu.vector_store %arg5[%c0_14, %c0_15], %31 {strides = array<i32>} : memref<16x128xf32, #tpu.memory_space<vmem>>, vector<16x128xf32>,
    return
  }
  func.func @transform_0(%arg0: i32) -> (i32, i32) {
    %c0_i32 = arith.constant 0 : i32
    %c0_i32_0 = arith.constant 0 : i32
    return %arg0, %c0_i32 : i32, i32
  }
  func.func @transform_1(%arg0: i32) -> (i32, i32) {
    %c0_i32 = arith.constant 0 : i32
    %c0_i32_0 = arith.constant 0 : i32
    %c0_i32_1 = arith.constant 0 : i32
    return %c0_i32, %c0_i32_0 : i32, i32
  }
  func.func @transform_2(%arg0: i32) -> (i32, i32) {
    %c0_i32 = arith.constant 0 : i32
    %c0_i32_0 = arith.constant 0 : i32
    %c0_i32_1 = arith.constant 0 : i32
    return %c0_i32, %c0_i32_0 : i32, i32
  }
  func.func @transform_3(%arg0: i32) -> (i32, i32) {
    %c0_i32 = arith.constant 0 : i32
    %c0_i32_0 = arith.constant 0 : i32
    %c0_i32_1 = arith.constant 0 : i32
    return %c0_i32, %c0_i32_0 : i32, i32
  }
  func.func @transform_4(%arg0: i32) -> (i32, i32) {
    %c0_i32 = arith.constant 0 : i32
    %c0_i32_0 = arith.constant 0 : i32
    return %arg0, %c0_i32 : i32, i32
  }
}

</mosaic_0001>

<bundles_post_ra>
// kernel: tpu_custom_call.1
= control target key start
LH: loop header
LB: loop body
LE: loop exit
PB: predicated region body
PF: predicated region fallthrough
CT: control target
= control target key end

     0   :  { %9 = vsyncpa [#allocation3], 0  ;;  %s1554_s0 = inlined_call_operand.hbm [shape: f32[64,32], index: 0, kind: input, shape index: {}]   ;;  %s1555_s1 = inlined_call_operand.hbm [shape: f32[32,256], index: 1, kind: input, shape index: {}]   ;;  %s1556_s2 = inlined_call_operand.hbm [shape: f32[4,128], index: 2, kind: input, shape index: {}]   ;;  %s1557_s3 = inlined_call_operand.hbm [shape: f32[256,128], index: 3, kind: input, shape index: {}]   ;;  %s1558_s4 = inlined_call_operand.hbm [shape: f32[64,128], index: 4, kind: output, shape index: {}]  }
   0x1   :  { %11 = vsyncpa [#allocation3 + $0x1], 0 }
   0x2   :  { %12 = vsyncpa [#allocation6], 0 }
   0x3   :  { %13 = vsyncpa [#allocation9], 0 }
   0x4   :  { %14 = vsyncpa [#allocation4], 0 }
   0x5   :  { %16 = vsyncpa [#allocation4 + $0x1], 0  ;;  %s1261_s15 = smov 0   ;;  %s1263_s16 = smov 0  }
   0x6   :  { %s1265_s17 = smov 0   ;;  %s1267_s18 = smov 0  }
   0x7 LB: > { %s1282_s19 = sadd.s32 4294967295, %s1221_s18   ;;  %s808_s20 = sadd.s32 4294967294, %s1221_s18   ;;  %s1221_s18 = sphi %s1267_s18, %s1580_s18   ;;  %s1217_s17 = sphi %s1265_s17, %s1579_s17   ;;  %s1213_s16 = sphi %s1263_s16, %s1578_s16   ;;  %s1209_s15 = sphi %s1261_s15, %s1577_s15  }
   0x8   : > { %p42_p0 = scmp.ne.s32.totalorder %s1213_s16, %s1209_s15  ;;  %p1559_p1 = scmp.eq.s32.totalorder %s1282_s19, 0 }
   0x9   : > { %p135_p3 = scmp.eq.s32.totalorder %s808_s20, 3  ;;  %p809_p5 = scmp.ge.s32.totalorder %s1221_s18, 1 }
   0xa   : > { %p1291_p4 = por %p1559_p1, %p42_p0  ;;  %p142_p7 = scmp.lt.s32.totalorder %s1221_s18, 5 }
   0xb   : > { %p1296_p6 = por %p135_p3, %p42_p0  ;;  %s1223_s24 = smov [#allocation5]  }
   0xc   : > { %s1562_s21 = scalar_select %p1291_p4, 1, 0 }
   0xd   : > { %s1563_s22 = scalar_select %p1296_p6, 1, 0 }
   0xe   : > { %p1301_p8 = pnand %p809_p5, %p142_p7  ;;  %s154_s25 = sshll.u32 %s1223_s24, 4  ;;  %s1305_s25 = int_to_ptr.vmem [resolvable:$true] %s154_s25 }
   0xf   : > { %s1224_s27 = smov [#allocation7]   ;;  %s1225_s29 = smov [#allocation8]  }
  0x10   : > { %s1564_s23 = scalar_select %p1301_p8, 1, 0 }
  0x11   : > { %p948_p9 = pneg %p1301_p8  ;;  %s168_s28 = sshll.u32 %s1224_s27, 4  ;;  %s1315_s28 = int_to_ptr.vmem [resolvable:$true] %s168_s28 }
  0x12   : > { %s1317_s30 = sshll.u32 %s1225_s29, 4  ;;  %s1033_s7 = scalar_lea.hbm %s1555_s1, 1024  ;;  %s179_s30 = int_to_ptr.vmem [resolvable:$true] %s1317_s30 }
  0x13   : > { %p1311_p10 = pnand %p948_p9, %p1559_p1  ;;  %p1034_p11 = scmp.ne.s32.totalorder %s1555_s1, %s1033_s7 }
  0x14   : > { %p1040_p3 = scmp.lt.u32.totalorder %s1033_s7, %s1555_s1 }
  0x15   : > { %p1327_p12 = pneg %p1311_p10 }
  0x17   : > { %p1036_p13 = pnand %p1327_p12, %p1034_p11 }
  0x19   : > { %p1037_p0 = pneg %p1036_p13 }
  0x1b   : > { %p1042_p5 = pnand %p1040_p3, %p1037_p0 }
  0x1d   : > { %1045 = shalt.err (!%p1042_p5)
}
  0x1e   : > { %s1046_s13 = scalar_lea.vmem %s1305_s25, 1024  ;;  %p1054_p2 = scmp.lt.s32.totalorder %s1305_s25, %s1305_s25 }
  0x1f   : > { %p1047_p7 = scmp.ne.s32.totalorder %s1305_s25, %s1046_s13  ;;  %p1055_p6 = scmp.lt.s32.totalorder %s1046_s13, %s1046_s13 }
  0x21   : > { %p1049_p9 = pnand %p1047_p7, %p1327_p12  ;;  %p1056_p11 = por %p1055_p6, %p1054_p2 }
  0x23   : > { %p1050_p1 = pneg %p1049_p9 }
  0x25   : > { %p1057_p13 = pnand %p1056_p11, %p1050_p1 }
  0x27   : > { %1060 = shalt.err (!%p1057_p13)
}
  0x28   : > { %s1226_s14 = smov 256   ;;  %s1227_s20 = smov 16  }
  0x29   : > { %951 = dma.hbm_to_vmem [thread:$0]  (!%p1311_p10), %s1555_s1, 1024, %s1305_s25, [#allocation6], %s1226_s14, %s1226_s14, %s1227_s20  }
  0x2a   : > { %s1061_s6 = scalar_lea.hbm %s1556_s2, 64 }
  0x2b   : > { %p1062_p2 = scmp.ne.s32.totalorder %s1556_s2, %s1061_s6  ;;  %p1068_p0 = scmp.lt.u32.totalorder %s1061_s6, %s1556_s2 }
  0x2d   : > { %p1064_p1 = pnand %p1062_p2, %p1327_p12 }
  0x2f   : > { %p1065_p6 = pneg %p1064_p1 }
  0x31   : > { %p1070_p3 = pnand %p1068_p0, %p1065_p6 }
  0x33   : > { %1073 = shalt.err (!%p1070_p3)
}
  0x34   : > { %s1074_s25 = scalar_lea.vmem %s1315_s28, 64  ;;  %p1082_p11 = scmp.lt.s32.totalorder %s1315_s28, %s1315_s28 }
  0x35   : > { %p1075_p5 = scmp.ne.s32.totalorder %s1315_s28, %s1074_s25  ;;  %p1083_p13 = scmp.lt.s32.totalorder %s1074_s25, %s1074_s25 }
  0x37   : > { %p1077_p7 = pnand %p1075_p5, %p1327_p12  ;;  %p1084_p2 = por %p1083_p13, %p1082_p11 }
  0x39   : > { %p1078_p9 = pneg %p1077_p7 }
  0x3b   : > { %p1085_p1 = pnand %p1084_p2, %p1078_p9 }
  0x3d   : > { %1088 = shalt.err (!%p1085_p1)
}
  0x3e   : > { %954 = dma.hbm_to_vmem [thread:$0]  (!%p1311_p10), %s1556_s2, 64, %s1315_s28, [#allocation6]  }
  0x3f   : > { %s1089_s24 = scalar_lea.hbm %s1557_s3, 4096 }
  0x40   : > { %p1090_p6 = scmp.ne.s32.totalorder %s1557_s3, %s1089_s24  ;;  %p1096_p5 = scmp.lt.u32.totalorder %s1089_s24, %s1557_s3 }
  0x42   : > { %p1092_p0 = pnand %p1090_p6, %p1327_p12 }
  0x44   : > { %p1093_p3 = pneg %p1092_p0 }
  0x46   : > { %p1098_p7 = pnand %p1096_p5, %p1093_p3 }
  0x48   : > { %1101 = shalt.err (!%p1098_p7)
}
  0x49   : > { %s1102_s7 = scalar_lea.vmem %s179_s30, 4096  ;;  %p1110_p2 = scmp.lt.s32.totalorder %s179_s30, %s179_s30 }
  0x4a   : > { %p1103_p9 = scmp.ne.s32.totalorder %s179_s30, %s1102_s7  ;;  %p1111_p1 = scmp.lt.s32.totalorder %s1102_s7, %s1102_s7 }
  0x4c   : > { %p1105_p11 = pnand %p1103_p9, %p1327_p12  ;;  %p1112_p4 = por %p1111_p1, %p1110_p2 }
  0x4e   : > { %p1106_p13 = pneg %p1105_p11 }
  0x50   : > { %p1113_p8 = pnand %p1112_p4, %p1106_p13 }
  0x52   : > { %1116 = shalt.err (!%p1113_p8)
}
  0x53   : > { %s1228_s28 = smov 128   ;;  %s1229_s10 = smov 8  }
  0x54   : > { %957 = dma.hbm_to_vmem [thread:$0]  (!%p1311_p10), %s1557_s3, 4096, %s179_s30, [#allocation9], %s1228_s28, %s1228_s28, %s1229_s10  }
  0x55   : > { %s1394_s11 = sadd.s32 1, %s1221_s18   ;;  %s29_s12 = sadd.s32 1, %s1217_s17 }
  0x56   : > { %s26_s25 = ssub.s32 %s1221_s18, %s1394_s11  ;;  %p36_p8 = scmp.ne.s32.totalorder %s1217_s17, %s1213_s16 }
  0x57   : > { %p27_p4 = scmp.eq.s32.totalorder %s26_s25, 0  ;;  %p37_p12 = scmp.eq.s32.totalorder %s1221_s18, 0 }
  0x58   : > { %p969_p6 = scmp.lt.s32.totalorder %s1221_s18, 4  ;;  %p1567_p3 = scmp.eq.s32.totalorder %s1282_s19, 3 }
  0x59   : > { %s1404_s13 = scalar_select %p27_p4, %s1217_s17, %s29_s12  }
  0x5a   : > { %p38_p0 = por %p37_p12, %p36_p8  ;;  %p1408_p5 = por %p1567_p3, %p36_p8 }
  0x5b   : > { %s192_s14 = sand.u32 1, %s1217_s17   ;;  %s836_s20 = sshll.u32 %s1221_s18, 8 }
  0x5c   : > { %s814_s30 = sshll.u32 %s192_s14, 4  ;;  %s1417_s29 = scalar_lea.hbm %s1554_s0, %s836_s20 }
  0x5d   : > { %s196_s5 = scalar_lea.vmem [#allocation2], %s814_s30  ;;  %p1419_p10 = pnand %p969_p6, %p38_p0 }
  0x5e   : > { %s203_s6 = sshll.u32 %s196_s5, 4  ;;  %s1425_s8 = scalar_lea.sflag [#allocation3], %s192_s14  ;;  %s1423_s6 = int_to_ptr.vmem [resolvable:$true] %s203_s6 }
  0x5f   : > { %s1117_s9 = scalar_lea.hbm %s1417_s29, 256  ;;  %p1119_p9 = pneg %p1419_p10 }
  0x60   : > { %p1118_p7 = scmp.ne.s32.totalorder %s1417_s29, %s1117_s9  ;;  %s1122_s20 = scalar_lea.hbm %s1554_s0, 1024 }
  0x61   : > { %p1123_p2 = scmp.lt.u32.totalorder %s1417_s29, %s1554_s0  ;;  %p1124_p1 = scmp.lt.u32.totalorder %s1122_s20, %s1117_s9 }
  0x62   : > { %p1120_p11 = pnand %p1119_p9, %p1118_p7  ;;  %p1126_p8 = scmp.lt.u32.totalorder %s1117_s9, %s1417_s29 }
  0x63   : > { %p1125_p4 = por %p1124_p1, %p1123_p2 }
  0x64   : > { %p1121_p13 = pneg %p1120_p11 }
  0x65   : > { %p1127_p12 = por %p1126_p8, %p1125_p4 }
  0x67   : > { %p1128_p6 = pnand %p1127_p12, %p1121_p13 }
  0x69   : > { %1131 = shalt.err (!%p1128_p6)
}
  0x6a   : > { %s1132_s14 = scalar_lea.vmem %s1423_s6, 256  ;;  %s1230_s27 = smov [#allocation2]  }
  0x6b   : > { %p1133_p0 = scmp.ne.s32.totalorder %s1423_s6, %s1132_s14  ;;  %s1137_s5 = sshll.u32 %s1230_s27, 4  ;;  %s1138_s5 = int_to_ptr.vmem [resolvable:$false] %s1137_s5 }
  0x6c   : > { %s1139_s25 = scalar_lea.vmem %s1138_s5, 512  ;;  %p1140_p11 = scmp.lt.s32.totalorder %s1423_s6, %s1138_s5 }
  0x6d   : > { %p1135_p3 = pnand %p1133_p0, %p1119_p9  ;;  %p1141_p2 = scmp.lt.s32.totalorder %s1139_s25, %s1132_s14 }
  0x6f   : > { %p1136_p7 = pneg %p1135_p3  ;;  %p1142_p1 = por %p1141_p2, %p1140_p11 }
  0x71   : > { %p1143_p4 = pnand %p1142_p1, %p1136_p7 }
  0x73   : > { %1146 = shalt.err (!%p1143_p4)
}
  0x74   : > { %961 = dma.hbm_to_vmem [thread:$0]  (!%p1419_p10), %s1417_s29, 256, %s1423_s6, %s1425_s8, %s1228_s28, %s1228_s28, %s1229_s10  }
  0x75   : > { %p1570_p9 = scmp.ne.s32.totalorder %s1564_s23, 0 }
  0x76   : > { %s1459_s9 = sand.u32 (!%p1570_p9), 1, %s1213_s16   ;;  %p1571_p13 = scmp.ne.s32.totalorder (!%p1570_p9), %s1562_s21, 0 }
  0x77   : > { %215 = sbr.rel (%p1570_p9) target bundleno = 1356 (0x54c), region = 36  ;;  %s818_s12 = sshll.u32 (!%p1570_p9), %s1459_s9, 4 }
  0x78   : > { %s218_s20 = scalar_lea.sflag (!%p1570_p9), [#allocation3], %s1459_s9  ;;  %s221_s7 = scalar_lea.vmem (!%p1570_p9), [#allocation2], %s818_s12 }
  0x7e   : > { %1192 = dma.done.wait (%p1571_p13), %s218_s20, 256  }
  0x7f   : > { %1194 = vsyncadd (%p1571_p13), %s218_s20, 4294967040  ;;  %p1572_p10 = scmp.eq.s32.totalorder %s1282_s19, 0 }
  0x81   : > { %1196 = dma.done.wait (%p1572_p10), [#allocation6], 1088   ;;  %p1573_p8 = pmov %p1572_p10 }
  0x83   : > { %1198 = vsyncadd (%p1573_p8), [#allocation6], 4294966208  ;;  %p1574_p12 = pmov %p1573_p8 }
  0x84   : > { %p1575_p6 = pmov %p1573_p8 }
  0x85   : > { %1200 = dma.done.wait (%p1574_p12), [#allocation9], 4096  }
  0x86   : > { %1202 = vsyncadd (%p1575_p6), [#allocation9], 4294963200  ;;  %v1231_v0 = vmov 0.0   ;;  %v263_v1 = vld [vmem:[#allocation5 + $0x8] sm:$0xff]  ;;  %v265_v2 = vld [vmem:[#allocation5 + $0x18] sm:$0xff]  ;;  %vm270_vm0 = vcmask 261120  }
  0x87   : > { %341 = vmatprep.mubr.f32.mxu0 %v1231_v0  ;;  %v262_v3 = vld [vmem:[#allocation5] sm:$0xff]  ;;  %v892_v4 = vpack.c.bf16 %v265_v2, %v263_v1  ;;  %v264_v5 = vld [vmem:[#allocation5 + $0x10] sm:$0xff]  ;;  %v267_v6 = vld [vmem:[#allocation5 + $0x28] sm:$0xff]  ;;  %vm465_vm1 = vcmask 64544   ;;  %vm355_vm2 = vcmask 31744   ;;  %s1232_s21 = smov 124  }
  0x88   : > { %v269_v7 = vld [vmem:[#allocation5 + $0x38] sm:$0xff]  ;;  %v894_v8 = vpack.c.bf16 %v264_v5, %v262_v3  ;;  %v266_v10 = vld [vmem:[#allocation5 + $0x20] sm:$0xff]  ;;  %v268_v11 = vld [vmem:[#allocation5 + $0x30] sm:$0xff]  ;;  %vm384_vm3 = vcmask 1043456   ;;  %s257_s23 = scalar_lea.vmem [#allocation10], %s818_s12  ;;  %s837_s10 = sshll.u32 %s1282_s19, 8 }
  0x89   : > { %v896_v9 = vpack.c.bf16 %v269_v7, %v267_v6  ;;  %893 = vmatprep.subr.bf16.mxu0 %v892_v4  ;;  %v898_v12 = vpack.c.bf16 %v268_v11, %v266_v10  ;;  %v260_v13 = vld [vmem:[%s221_s7] sm:$0xff]  ;;  %v261_v14 = vld [vmem:[%s221_s7 + $0x8] sm:$0xff]  ;;  %s706_s28 = sshll.u32 %s257_s23, 4  ;;  %s1511_s8 = scalar_lea.hbm %s1558_s4, %s837_s10  ;;  %s1506_s28 = int_to_ptr.vmem [resolvable:$true] %s706_s28 }
  0x8a   : > { %895 = vmatpush1.bf16.msra.mxu0 %v894_v8  ;;  %v354_v45 = vld [vmem:[#allocation7] sm:$0xf]  ;;  %v599_v60 = vld [vmem:[#allocation8 + $0x80] sm:$0xff]  ;;  %v600_v61 = vld [vmem:[#allocation8 + $0x88] sm:$0xff]  ;;  %s693_s30 = scalar_lea.sflag [#allocation4], %s1459_s9  ;;  %s1147_s24 = scalar_lea.vmem %s1506_s28, 256 }
  0x8b   : > { %897 = vmatprep.subr.bf16.mxu0 %v896_v9  ;;  %v583_v62 = vld [vmem:[#allocation8] sm:$0xff]  ;;  %v900_v63 = vpack.c.bf16 %v600_v61, %v599_v60  ;;  %v601_v1 = vld [vmem:[#allocation8 + $0x90] sm:$0xff]  ;;  %v602_v2 = vld [vmem:[#allocation8 + $0x98] sm:$0xff]  ;;  %p1148_p0 = scmp.ne.s32.totalorder %s1506_s28, %s1147_s24  ;;  %s1233_s19 = smov [#allocation10]  }
  0x8c   : > { %v904_v4 = vpack.c.bf16 %v602_v2, %v601_v1  ;;  %v585_v5 = vld [vmem:[#allocation8 + $0x10] sm:$0xff]  ;;  %v586_v6 = vld [vmem:[#allocation8 + $0x18] sm:$0xff]  ;;  %v603_v7 = vld [vmem:[#allocation8 + $0xa0] sm:$0xff]  ;;  %s1151_s14 = sshll.u32 %s1233_s19, 4  ;;  %s1152_s14 = int_to_ptr.vmem [resolvable:$false] %s1151_s14 }
  0x8d   : > { %901 = vmatprep.subr.bf16.mxu1 %v900_v63  ;;  %v604_v8 = vld [vmem:[#allocation8 + $0xa8] sm:$0xff]  ;;  %v906_v9 = vpack.c.bf16 %v586_v6, %v585_v5  ;;  %v587_v11 = vld [vmem:[#allocation8 + $0x20] sm:$0xff]  ;;  %p1149_p3 = pnand %p1148_p0, %p1408_p5  ;;  %s1153_s27 = scalar_lea.vmem %s1152_s14, 512 }
  0x8e   : > { %899 = vmatpush1.bf16.msra.mxu0 %v898_v12  ;;  %v908_v10 = vpack.c.bf16 %v604_v8, %v603_v7  ;;  %v588_v12 = vld [vmem:[#allocation8 + $0x28] sm:$0xff]  ;;  %p1154_p11 = scmp.lt.s32.totalorder %s1506_s28, %s1152_s14  ;;  %p1155_p2 = scmp.lt.s32.totalorder %s1153_s27, %s1147_s24 }
  0x8f   : > { %882 = vmatprep.subr.msk.mxu0 %vm384_vm3, %v354_v45  ;;  %p1150_p7 = pneg %p1149_p3 }
  0x90   : > { %p1156_p1 = por %p1155_p2, %p1154_p11 }
  0x91   : > { %823 = vmatmul.mubr.msk.f32.vlgmr.msra.gmra.mrb[0].mxu0 %vm270_vm0, %v260_v13  ;;  %v605_v13 = vld [vmem:[#allocation8 + $0xb0] sm:$0xff] }
  0x92   : > { %347 = vmatprep.mubr.f32.mxu0 %v1231_v0  ;;  %883 = vmatpush3.msk.msra.mxu0 %vm384_vm3, %v354_v45  ;;  %v584_v0 = vld [vmem:[#allocation8 + $0x8] sm:$0xff]  ;;  %p1157_p4 = pnand %p1156_p1, %p1150_p7 }
  0x93   : > { %887 = vmatprep.subr.msk.mxu0 %vm384_vm3, %v354_v45  ;;  %v902_v3 = vpack.c.bf16 %v584_v0, %v583_v62 }
  0x95   : > { %824 = vmatmul.mubr.msk.f32.gmra.mrb[2].mxu0 %vm270_vm0, %v261_v14  ;;  %903 = vmatpush3.bf16.msra.mxu1 %v902_v3  ;;  %v606_v14 = vld [vmem:[#allocation8 + $0xb8] sm:$0xff] }
  0x96   : > { %905 = vmatprep.subr.bf16.mxu1 %v904_v4 }
  0x99   : > { %907 = vmatpush3.bf16.msra.mxu1 %v906_v9 }
  0x9a   : > { %909 = vmatprep.subr.bf16.mxu1 %v908_v10 }
 0x164   : > { %v1477_v15 = vpop.f32.mrb[0].mxu0 }
 0x165   : > { %v345_v16 = vpop.f32.mrb[1].mxu0 }
 0x166   : > { %v466_v17 = vsel %vm465_vm1, %v345_v16, -inf  ;;  %v356_v21 = vsel %vm355_vm2, %v345_v16, -inf }
 0x167   : > { %467 = vmax.xlane.f32.xlu0 %v466_v17  ;;  %v912_v17 = vpack.c.bf16 %v606_v14, %v605_v13 }
 0x168   : > { %v1479_v18 = vpop.f32.mrb[2].mxu0 }
 0x169   : > { %v351_v19 = vpop.f32.mrb[3].mxu0 }
 0x16a   : > { %v469_v20 = vsel %vm465_vm1, %v351_v19, -inf  ;;  %v359_v30 = vsel %vm355_vm2, %v351_v19, -inf }
 0x16b   : > { %470 = vmax.xlane.f32.xlu0 %v469_v20  ;;  %v590_v20 = vld [vmem:[#allocation8 + $0x38] sm:$0xff] }
 0x16f   : > { %357 = vmax.xlane.f32.xlu0 %v356_v21  ;;  %v607_v21 = vld [vmem:[#allocation8 + $0xc0] sm:$0xff] }
 0x1f4   : > { %v468_v22 = vpop.xlane.xlu0 %467 }
 0x1f5   : > { %v472_v23 = vsub.f32 %v345_v16, %v468_v22  ;;  %v608_v22 = vld [vmem:[#allocation8 + $0xc8] sm:$0xff] }
 0x1f7   : > { %v474_v24 = vmul.f32 1.442695, %v472_v23 }
 0x1f8   : > { %v471_v25 = vpop.xlane.xlu0 %470 }
 0x1f9   : > { %1017 = vpow2.f32 %v474_v24  ;;  %v473_v26 = vsub.f32 %v351_v19, %v471_v25  ;;  %v916_v24 = vpack.c.bf16 %v608_v22, %v607_v21  ;;  %v591_v25 = vld [vmem:[#allocation8 + $0x40] sm:$0xff] }
 0x1fb   : > { %v476_v27 = vmul.f32 1.442695, %v473_v26  ;;  %v592_v26 = vld [vmem:[#allocation8 + $0x48] sm:$0xff] }
 0x1fc   : > { %v358_v31 = vpop.xlane.xlu0 %357 }
 0x1fd   : > { %1019 = vpow2.f32 %v476_v27  ;;  %v362_v32 = vsub.f32 %v345_v16, %v358_v31  ;;  %v910_v16 = vpack.c.bf16 %v588_v12, %v587_v11  ;;  %v609_v27 = vld [vmem:[#allocation8 + $0xd0] sm:$0xff] }
 0x1fe   : > { %v593_v31 = vld [vmem:[#allocation8 + $0x50] sm:$0xff] }
 0x1ff   : > { %v364_v33 = vmul.f32 1.442695, %v362_v32  ;;  %911 = vmatpush3.bf16.msra.mxu1 %v910_v16  ;;  %v594_v32 = vld [vmem:[#allocation8 + $0x58] sm:$0xff] }
 0x200   : > { %913 = vmatprep.subr.bf16.mxu1 %v912_v17 }
 0x201   : > { %1021 = vpow2.f32 %v364_v33  ;;  %v611_v33 = vld [vmem:[#allocation8 + $0xe0] sm:$0xff] }
 0x203   : > { %v1018_v28 = vpop.eup %1017 }
 0x204   : > { %480 = vrot.lane.b32.xlu1 %v1018_v28, %s1232_s21 }
 0x207   : > { %v1020_v29 = vpop.eup %1019 }
 0x208   : > { %482 = vrot.lane.b32.xlu1 %v1020_v29, %s1232_s21 }
 0x20b   : > { %v1022_v38 = vpop.eup %1021 }
 0x20c   : > { %v368_v39 = vsel %vm355_vm2, %v1022_v38, 0.0 }
 0x22c   : > { %360 = vmax.xlane.f32.xlu1 %v359_v30 }
 0x276   : > { %v481_v34 = vpop.permute.xlu1 %480 }
 0x277   : > { %v486_v35 = vsel %vm355_vm2, %v481_v34, 0.0  ;;  %v612_v34 = vld [vmem:[#allocation8 + $0xe8] sm:$0xff] }
 0x278   : > { %487 = vadd.xlane.f32.xlu0 %v486_v35  ;;  %v922_v35 = vpack.c.bf16 %v594_v32, %v593_v31 }
 0x27a   : > { %v483_v36 = vpop.permute.xlu1 %482 }
 0x27b   : > { %v489_v37 = vsel %vm355_vm2, %v483_v36, 0.0  ;;  %v924_v36 = vpack.c.bf16 %v612_v34, %v611_v33 }
 0x27c   : > { %490 = vadd.xlane.f32.xlu0 %v489_v37  ;;  %v595_v37 = vld [vmem:[#allocation8 + $0x60] sm:$0xff] }
 0x280   : > { %369 = vadd.xlane.f32.xlu0 %v368_v39 }
 0x2b9   : > { %v361_v40 = vpop.xlane.xlu1 %360 }
 0x2ba   : > { %v363_v41 = vsub.f32 %v351_v19, %v361_v40  ;;  %v589_v19 = vld [vmem:[#allocation8 + $0x30] sm:$0xff] }
 0x2bb   : > { %v914_v23 = vpack.c.bf16 %v590_v20, %v589_v19  ;;  %v613_v40 = vld [vmem:[#allocation8 + $0xf0] sm:$0xff] }
 0x2bc   : > { %v366_v42 = vmul.f32 1.442695, %v363_v41  ;;  %v614_v41 = vld [vmem:[#allocation8 + $0xf8] sm:$0xff] }
 0x2bd   : > { %915 = vmatpush3.bf16.msra.mxu1 %v914_v23 }
 0x2be   : > { %1023 = vpow2.f32 %v366_v42  ;;  %917 = vmatprep.subr.bf16.mxu1 %v916_v24  ;;  %v928_v42 = vpack.c.bf16 %v614_v41, %v613_v40 }
 0x2c8   : > { %v1024_v43 = vpop.eup %1023 }
 0x2c9   : > { %v371_v44 = vsel %vm355_vm2, %v1024_v43, 0.0 }
 0x2ca   : > { %372 = vadd.xlane.f32.xlu0 %v371_v44  ;;  %v598_v44 = vld [vmem:[#allocation8 + $0x78] sm:$0xff] }
 0x305   : > { %v488_v46 = vpop.xlane.xlu0 %487 }
 0x306   : > { %1025 = vrcp.f32 %v488_v46 }
 0x309   : > { %v491_v47 = vpop.xlane.xlu0 %490 }
 0x30a   : > { %1027 = vrcp.f32 %v491_v47 }
 0x30d   : > { %v370_v48 = vpop.xlane.xlu0 %369 }
 0x30e   : > { %1029 = vrcp.f32 %v370_v48 }
 0x310   : > { %v1026_v49 = vpop.eup %1025 }
 0x311   : > { %v493_v50 = vmul.f32 %v1026_v49, %v1018_v28  ;;  %v610_v28 = vld [vmem:[#allocation8 + $0xd8] sm:$0xff] }
 0x312   : > { %v920_v30 = vpack.c.bf16 %v610_v28, %v609_v27 }
 0x313   : > { %498 = vrot.lane.b32.xlu0 %v493_v50, %s1232_s21 }
 0x314   : > { %v1028_v51 = vpop.eup %1027 }
 0x315   : > { %v495_v52 = vmul.f32 %v1028_v51, %v1020_v29  ;;  %v918_v29 = vpack.c.bf16 %v592_v26, %v591_v25 }
 0x317   : > { %500 = vrot.lane.b32.xlu1 %v495_v52, %s1232_s21  ;;  %919 = vmatpush3.bf16.msra.mxu1 %v918_v29 }
 0x318   : > { %v1030_v53 = vpop.eup %1029  ;;  %921 = vmatprep.subr.bf16.mxu1 %v920_v30 }
 0x319   : > { %v375_v54 = vmul.f32 %v1030_v53, %v1022_v38  ;;  %v596_v38 = vld [vmem:[#allocation8 + $0x68] sm:$0xff] }
 0x31a   : > { %v926_v39 = vpack.c.bf16 %v596_v38, %v595_v37 }
 0x31b   : > { %884 = vmatprep.mubr.msk.f32.mxu0 %vm355_vm2, %v375_v54  ;;  %923 = vmatpush3.bf16.msra.mxu1 %v922_v35 }
 0x31c   : > { %925 = vmatprep.subr.bf16.mxu1 %v924_v36 }
 0x31f   : > { %927 = vmatpush3.bf16.msra.mxu1 %v926_v39 }
 0x320   : > { %929 = vmatprep.subr.bf16.mxu1 %v928_v42 }
 0x357   : > { %v373_v55 = vpop.xlane.xlu0 %372 }
 0x358   : > { %1031 = vrcp.f32 %v373_v55 }
 0x362   : > { %v1032_v56 = vpop.eup %1031 }
 0x363   : > { %v377_v57 = vmul.f32 %v1032_v56, %v1024_v43  ;;  %v597_v43 = vld [vmem:[#allocation8 + $0x70] sm:$0xff] }
 0x365   : > { %885 = vmatmul.mubr.msk.f32.vlgmr.msra.gmra.mrb[4].mxu0 %vm355_vm2, %v377_v57 }
 0x366   : > { %888 = vmatpush3.msk.msra.mxu0 %vm384_vm3, %v354_v45  ;;  %v930_v45 = vpack.c.bf16 %v598_v44, %v597_v43 }
 0x368   : > { %931 = vmatpush3.bf16.msra.mxu1 %v930_v45 }
 0x385   : > { %v499_v58 = vpop.permute.xlu0 %498 }
 0x386   : > { %889 = vmatprep.mubr.msk.f32.mxu0 %vm355_vm2, %v499_v58 }
 0x389   : > { %v501_v59 = vpop.permute.xlu1 %500 }
 0x38a   : > { %890 = vmatmul.mubr.msk.f32.vlgmr.msra.gmra.mrb[6].mxu0 %vm355_vm2, %v501_v59 }
 0x438   : > { %v886_v46 = vpop.f32.mrb[4].mxu0 }
 0x439   : > { %v464_v47 = vmul.f32 %v886_v46, %v1479_v18  ;;  %v454_v48 = vpop.f32.mrb[5].mxu0 }
 0x43a   : > { %v463_v49 = vmul.f32 %v454_v48, %v1477_v15 }
 0x45d   : > { %v891_v50 = vpop.f32.mrb[6].mxu0 }
 0x45e   : > { %v582_v51 = vmul.f32 %v891_v50, %v1479_v18  ;;  %v572_v52 = vpop.f32.mrb[7].mxu0 }
 0x45f   : > { %v581_v53 = vmul.f32 %v572_v52, %v1477_v15 }
 0x461   : > { %679 = vmatprep.mubr.f32.mxu1 %v581_v53 }
 0x462   : > { %680 = vmatmul.mubr.f32.vlgmr.msra.gmra.mrb[0].mxu1 %v463_v49 }
 0x463   : > { %684 = vmatprep.mubr.f32.mxu1 %v582_v51 }
 0x466   : > { %685 = vmatmul.mubr.f32.gmra.mrb[2].mxu1 %v464_v47 }
 0x535   : > { %v876_v54 = vpop.f32.mrb[0].mxu1 }
 0x536   : > { %v877_v55 = vpop.f32.mrb[1].mxu1 }
 0x537   : > { %v878_v56 = vadd.f32 %v877_v55, %v876_v54 }
 0x539   : > { %690 = vst [vmem:[%s257_s23] sm:$0xff] %v878_v56  ;;  %v879_v15 = vpop.f32.mrb[2].mxu1 }
 0x53a   : > { %v880_v18 = vpop.f32.mrb[3].mxu1 }
 0x53b   : > { %v881_v57 = vadd.f32 %v880_v18, %v879_v15 }
 0x53d   : > { %691 = vst [vmem:[%s257_s23 + $0x8] sm:$0xff] %v881_v57 }
 0x53e   : > { %1160 = shalt.err (!%p1157_p4)
}
 0x53f   : > { %s1161_s5 = scalar_lea.hbm %s1511_s8, 256  ;;  %s1165_s20 = scalar_lea.hbm %s1558_s4, 1024 }
 0x540   : > { %p1162_p9 = scmp.ne.s32.totalorder %s1511_s8, %s1161_s5  ;;  %p1166_p8 = scmp.lt.u32.totalorder %s1511_s8, %s1558_s4 }
 0x541   : > { %p1167_p12 = scmp.lt.u32.totalorder %s1165_s20, %s1161_s5  ;;  %p1169_p0 = scmp.lt.u32.totalorder %s1161_s5, %s1511_s8 }
 0x542   : > { %p1163_p13 = pnand %p1162_p9, %p1408_p5 }
 0x543   : > { %p1168_p6 = por %p1167_p12, %p1166_p8 }
 0x544   : > { %p1164_p10 = pneg %p1163_p13 }
 0x545   : > { %p1170_p3 = por %p1169_p0, %p1168_p6 }
 0x547   : > { %p1171_p7 = pnand %p1170_p3, %p1164_p10 }
 0x549   : > { %1174 = shalt.err (!%p1171_p7)
}
 0x54a   : > { %s1234_s23 = smov 128   ;;  %s1235_s10 = smov 8  }
 0x54b   : > { %946 = dma.vmem_to_hbm [thread:$0]  (%p1408_p5), %s1506_s28, 256, %s1511_s8, %s693_s30, %s1234_s23, %s1234_s23, %s1235_s10  }
 0x54c PF: > { %p973_p11 = scmp.ge.s32.totalorder %s1221_s18, 2  ;;  %s721_s29 = sand.u32 1, %s1209_s15  }
 0x54d   : > { %p1576_p2 = scmp.ne.s32.totalorder %s1563_s22, 0  ;;  %s722_s6 = scalar_lea.sflag [#allocation4], %s721_s29 }
 0x54f   : > { %p963_p1 = pnand %p973_p11, %p1576_p2 }
 0x551   : > { %1204 = dma.done.wait (!%p963_p1), %s722_s6, 256  }
 0x552   : > { %1206 = vsyncadd (!%p963_p1), %s722_s6, 4294967040  ;;  %p19_p4 = scmp.ge.s32.totalorder %s1394_s11, 6   ;;  %s1577_s15 = smov %s1213_s16 }
 0x553   : > { %s1578_s16 = smov %s1217_s17  ;;  %s1579_s17 = smov %s1404_s13 }
 0x554   : > { %s1580_s18 = smov %s1394_s11  ;;  %21 = sbr.rel (!%p19_p4) target bundleno = 7 (0x7), region = 93 }
 0x55b   :  { %727 = vsyncpa [#allocation3], 1 }
 0x55c   :  { %729 = vsyncpa [#allocation3 + $0x1], 1 }
 0x55d   :  { %730 = vsyncpa [#allocation6], 1 }
 0x55e   :  { %731 = vsyncpa [#allocation9], 1 }
 0x55f   :  { %732 = vsyncpa [#allocation4], 1 }
 0x560   :  { %734 = vsyncpa [#allocation4 + $0x1], 1 }

// kernel: tpu_custom_call.1
= control target key start
LH: loop header
LB: loop body
LE: loop exit
PB: predicated region body
PF: predicated region fallthrough
CT: control target
= control target key end

     0   :  { %9 = vsyncpa [#allocation3], 0  ;;  %s1554_s0 = inlined_call_operand.hbm [shape: f32[64,32], index: 0, kind: input, shape index: {}]   ;;  %s1555_s1 = inlined_call_operand.hbm [shape: f32[32,256], index: 1, kind: input, shape index: {}]   ;;  %s1556_s2 = inlined_call_operand.hbm [shape: f32[4,128], index: 2, kind: input, shape index: {}]   ;;  %s1557_s3 = inlined_call_operand.hbm [shape: f32[256,128], index: 3, kind: input, shape index: {}]   ;;  %s1558_s4 = inlined_call_operand.hbm [shape: f32[64,128], index: 4, kind: output, shape index: {}]  }
   0x1   :  { %11 = vsyncpa [#allocation3 + $0x1], 0 }
   0x2   :  { %12 = vsyncpa [#allocation6], 0 }
   0x3   :  { %13 = vsyncpa [#allocation9], 0 }
   0x4   :  { %14 = vsyncpa [#allocation4], 0 }
   0x5   :  { %16 = vsyncpa [#allocation4 + $0x1], 0  ;;  %s1261_s15 = smov 0   ;;  %s1263_s16 = smov 0  }
   0x6   :  { %s1265_s17 = smov 0   ;;  %s1267_s18 = smov 0  }
   0x7 LB: > { %s1282_s19 = sadd.s32 4294967295, %s1221_s18   ;;  %s808_s20 = sadd.s32 4294967294, %s1221_s18   ;;  %s1221_s18 = sphi %s1267_s18, %s1580_s18   ;;  %s1217_s17 = sphi %s1265_s17, %s1579_s17   ;;  %s1213_s16 = sphi %s1263_s16, %s1578_s16   ;;  %s1209_s15 = sphi %s1261_s15, %s1577_s15  }
   0x8   : > { %p42_p0 = scmp.ne.s32.totalorder %s1213_s16, %s1209_s15  ;;  %p1559_p1 = scmp.eq.s32.totalorder %s1282_s19, 0 }
   0x9   : > { %p135_p3 = scmp.eq.s32.totalorder %s808_s20, 3  ;;  %p809_p5 = scmp.ge.s32.totalorder %s1221_s18, 1 }
   0xa   : > { %p1291_p4 = por %p1559_p1, %p42_p0  ;;  %p142_p7 = scmp.lt.s32.totalorder %s1221_s18, 5 }
   0xb   : > { %p1296_p6 = por %p135_p3, %p42_p0  ;;  %s1223_s24 = smov [#allocation5]  }
   0xc   : > { %s1562_s21 = scalar_select %p1291_p4, 1, 0 }
   0xd   : > { %s1563_s22 = scalar_select %p1296_p6, 1, 0 }
   0xe   : > { %p1301_p8 = pnand %p809_p5, %p142_p7  ;;  %s154_s25 = sshll.u32 %s1223_s24, 4  ;;  %s1305_s25 = int_to_ptr.vmem [resolvable:$true] %s154_s25 }
   0xf   : > { %s1224_s27 = smov [#allocation7]   ;;  %s1225_s29 = smov [#allocation8]  }
  0x10   : > { %s1564_s23 = scalar_select %p1301_p8, 1, 0 }
  0x11   : > { %p948_p9 = pneg %p1301_p8  ;;  %s168_s28 = sshll.u32 %s1224_s27, 4  ;;  %s1315_s28 = int_to_ptr.vmem [resolvable:$true] %s168_s28 }
  0x12   : > { %s1317_s30 = sshll.u32 %s1225_s29, 4  ;;  %s1033_s7 = scalar_lea.hbm %s1555_s1, 1024  ;;  %s179_s30 = int_to_ptr.vmem [resolvable:$true] %s1317_s30 }
  0x13   : > { %p1311_p10 = pnand %p948_p9, %p1559_p1  ;;  %p1034_p11 = scmp.ne.s32.totalorder %s1555_s1, %s1033_s7 }
  0x14   : > { %p1040_p3 = scmp.lt.u32.totalorder %s1033_s7, %s1555_s1 }
  0x15   : > { %p1327_p12 = pneg %p1311_p10 }
  0x17   : > { %p1036_p13 = pnand %p1327_p12, %p1034_p11 }
  0x19   : > { %p1037_p0 = pneg %p1036_p13 }
  0x1b   : > { %p1042_p5 = pnand %p1040_p3, %p1037_p0 }
  0x1d   : > { %1045 = shalt.err (!%p1042_p5)
}
  0x1e   : > { %s1046_s13 = scalar_lea.vmem %s1305_s25, 1024  ;;  %p1054_p2 = scmp.lt.s32.totalorder %s1305_s25, %s1305_s25 }
  0x1f   : > { %p1047_p7 = scmp.ne.s32.totalorder %s1305_s25, %s1046_s13  ;;  %p1055_p6 = scmp.lt.s32.totalorder %s1046_s13, %s1046_s13 }
  0x21   : > { %p1049_p9 = pnand %p1047_p7, %p1327_p12  ;;  %p1056_p11 = por %p1055_p6, %p1054_p2 }
  0x23   : > { %p1050_p1 = pneg %p1049_p9 }
  0x25   : > { %p1057_p13 = pnand %p1056_p11, %p1050_p1 }
  0x27   : > { %1060 = shalt.err (!%p1057_p13)
}
  0x28   : > { %s1226_s14 = smov 256   ;;  %s1227_s20 = smov 16  }
  0x29   : > { %951 = dma.hbm_to_vmem [thread:$0]  (!%p1311_p10), %s1555_s1, 1024, %s1305_s25, [#allocation6], %s1226_s14, %s1226_s14, %s1227_s20  }
  0x2a   : > { %s1061_s6 = scalar_lea.hbm %s1556_s2, 64 }
  0x2b   : > { %p1062_p2 = scmp.ne.s32.totalorder %s1556_s2, %s1061_s6  ;;  %p1068_p0 = scmp.lt.u32.totalorder %s1061_s6, %s1556_s2 }
  0x2d   : > { %p1064_p1 = pnand %p1062_p2, %p1327_p12 }
  0x2f   : > { %p1065_p6 = pneg %p1064_p1 }
  0x31   : > { %p1070_p3 = pnand %p1068_p0, %p1065_p6 }
  0x33   : > { %1073 = shalt.err (!%p1070_p3)
}
  0x34   : > { %s1074_s25 = scalar_lea.vmem %s1315_s28, 64  ;;  %p1082_p11 = scmp.lt.s32.totalorder %s1315_s28, %s1315_s28 }
  0x35   : > { %p1075_p5 = scmp.ne.s32.totalorder %s1315_s28, %s1074_s25  ;;  %p1083_p13 = scmp.lt.s32.totalorder %s1074_s25, %s1074_s25 }
  0x37   : > { %p1077_p7 = pnand %p1075_p5, %p1327_p12  ;;  %p1084_p2 = por %p1083_p13, %p1082_p11 }
  0x39   : > { %p1078_p9 = pneg %p1077_p7 }
  0x3b   : > { %p1085_p1 = pnand %p1084_p2, %p1078_p9 }
  0x3d   : > { %1088 = shalt.err (!%p1085_p1)
}
  0x3e   : > { %954 = dma.hbm_to_vmem [thread:$0]  (!%p1311_p10), %s1556_s2, 64, %s1315_s28, [#allocation6]  }
  0x3f   : > { %s1089_s24 = scalar_lea.hbm %s1557_s3, 4096 }
  0x40   : > { %p1090_p6 = scmp.ne.s32.totalorder %s1557_s3, %s1089_s24  ;;  %p1096_p5 = scmp.lt.u32.totalorder %s1089_s24, %s1557_s3 }
  0x42   : > { %p1092_p0 = pnand %p1090_p6, %p1327_p12 }
  0x44   : > { %p1093_p3 = pneg %p1092_p0 }
  0x46   : > { %p1098_p7 = pnand %p1096_p5, %p1093_p3 }
  0x48   : > { %1101 = shalt.err (!%p1098_p7)
}
  0x49   : > { %s1102_s7 = scalar_lea.vmem %s179_s30, 4096  ;;  %p1110_p2 = scmp.lt.s32.totalorder %s179_s30, %s179_s30 }
  0x4a   : > { %p1103_p9 = scmp.ne.s32.totalorder %s179_s30, %s1102_s7  ;;  %p1111_p1 = scmp.lt.s32.totalorder %s1102_s7, %s1102_s7 }
  0x4c   : > { %p1105_p11 = pnand %p1103_p9, %p1327_p12  ;;  %p1112_p4 = por %p1111_p1, %p1110_p2 }
  0x4e   : > { %p1106_p13 = pneg %p1105_p11 }
  0x50   : > { %p1113_p8 = pnand %p1112_p4, %p1106_p13 }
  0x52   : > { %1116 = shalt.err (!%p1113_p8)
}
  0x53   : > { %s1228_s28 = smov 128   ;;  %s1229_s10 = smov 8  }
  0x54   : > { %957 = dma.hbm_to_vmem [thread:$0]  (!%p1311_p10), %s1557_s3, 4096, %s179_s30, [#allocation9], %s1228_s28, %s1228_s28, %s1229_s10  }
  0x55   : > { %s1394_s11 = sadd.s32 1, %s1221_s18   ;;  %s29_s12 = sadd.s32 1, %s1217_s17 }
  0x56   : > { %s26_s25 = ssub.s32 %s1221_s18, %s1394_s11  ;;  %p36_p8 = scmp.ne.s32.totalorder %s1217_s17, %s1213_s16 }
  0x57   : > { %p27_p4 = scmp.eq.s32.totalorder %s26_s25, 0  ;;  %p37_p12 = scmp.eq.s32.totalorder %s1221_s18, 0 }
  0x58   : > { %p969_p6 = scmp.lt.s32.totalorder %s1221_s18, 4  ;;  %p1567_p3 = scmp.eq.s32.totalorder %s1282_s19, 3 }
  0x59   : > { %s1404_s13 = scalar_select %p27_p4, %s1217_s17, %s29_s12  }
  0x5a   : > { %p38_p0 = por %p37_p12, %p36_p8  ;;  %p1408_p5 = por %p1567_p3, %p36_p8 }
  0x5b   : > { %s192_s14 = sand.u32 1, %s1217_s17   ;;  %s836_s20 = sshll.u32 %s1221_s18, 8 }
  0x5c   : > { %s814_s30 = sshll.u32 %s192_s14, 4  ;;  %s1417_s29 = scalar_lea.hbm %s1554_s0, %s836_s20 }
  0x5d   : > { %s196_s5 = scalar_lea.vmem [#allocation2], %s814_s30  ;;  %p1419_p10 = pnand %p969_p6, %p38_p0 }
  0x5e   : > { %s203_s6 = sshll.u32 %s196_s5, 4  ;;  %s1425_s8 = scalar_lea.sflag [#allocation3], %s192_s14  ;;  %s1423_s6 = int_to_ptr.vmem [resolvable:$true] %s203_s6 }
  0x5f   : > { %s1117_s9 = scalar_lea.hbm %s1417_s29, 256  ;;  %p1119_p9 = pneg %p1419_p10 }
  0x60   : > { %p1118_p7 = scmp.ne.s32.totalorder %s1417_s29, %s1117_s9  ;;  %s1122_s20 = scalar_lea.hbm %s1554_s0, 1024 }
  0x61   : > { %p1123_p2 = scmp.lt.u32.totalorder %s1417_s29, %s1554_s0  ;;  %p1124_p1 = scmp.lt.u32.totalorder %s1122_s20, %s1117_s9 }
  0x62   : > { %p1120_p11 = pnand %p1119_p9, %p1118_p7  ;;  %p1126_p8 = scmp.lt.u32.totalorder %s1117_s9, %s1417_s29 }
  0x63   : > { %p1125_p4 = por %p1124_p1, %p1123_p2 }
  0x64   : > { %p1121_p13 = pneg %p1120_p11 }
  0x65   : > { %p1127_p12 = por %p1126_p8, %p1125_p4 }
  0x67   : > { %p1128_p6 = pnand %p1127_p12, %p1121_p13 }
  0x69   : > { %1131 = shalt.err (!%p1128_p6)
}
  0x6a   : > { %s1132_s14 = scalar_lea.vmem %s1423_s6, 256  ;;  %s1230_s27 = smov [#allocation2]  }
  0x6b   : > { %p1133_p0 = scmp.ne.s32.totalorder %s1423_s6, %s1132_s14  ;;  %s1137_s5 = sshll.u32 %s1230_s27, 4  ;;  %s1138_s5 = int_to_ptr.vmem [resolvable:$false] %s1137_s5 }
  0x6c   : > { %s1139_s25 = scalar_lea.vmem %s1138_s5, 512  ;;  %p1140_p11 = scmp.lt.s32.totalorder %s1423_s6, %s1138_s5 }
  0x6d   : > { %p1135_p3 = pnand %p1133_p0, %p1119_p9  ;;  %p1141_p2 = scmp.lt.s32.totalorder %s1139_s25, %s1132_s14 }
  0x6f   : > { %p1136_p7 = pneg %p1135_p3  ;;  %p1142_p1 = por %p1141_p2, %p1140_p11 }
  0x71   : > { %p1143_p4 = pnand %p1142_p1, %p1136_p7 }
  0x73   : > { %1146 = shalt.err (!%p1143_p4)
}
  0x74   : > { %961 = dma.hbm_to_vmem [thread:$0]  (!%p1419_p10), %s1417_s29, 256, %s1423_s6, %s1425_s8, %s1228_s28, %s1228_s28, %s1229_s10  }
  0x75   : > { %p1570_p9 = scmp.ne.s32.totalorder %s1564_s23, 0 }
  0x76   : > { %s1459_s9 = sand.u32 (!%p1570_p9), 1, %s1213_s16   ;;  %p1571_p13 = scmp.ne.s32.totalorder (!%p1570_p9), %s1562_s21, 0 }
  0x77   : > { %215 = sbr.rel (%p1570_p9) target bundleno = 1356 (0x54c), region = 36  ;;  %s818_s12 = sshll.u32 (!%p1570_p9), %s1459_s9, 4 }
  0x78   : > { %s218_s20 = scalar_lea.sflag (!%p1570_p9), [#allocation3], %s1459_s9  ;;  %s221_s7 = scalar_lea.vmem (!%p1570_p9), [#allocation2], %s818_s12 }
  0x7e   : > { %1192 = dma.done.wait (%p1571_p13), %s218_s20, 256  }
  0x7f   : > { %1194 = vsyncadd (%p1571_p13), %s218_s20, 4294967040  ;;  %p1572_p10 = scmp.eq.s32.totalorder %s1282_s19, 0 }
  0x81   : > { %1196 = dma.done.wait (%p1572_p10), [#allocation6], 1088   ;;  %p1573_p8 = pmov %p1572_p10 }
  0x83   : > { %1198 = vsyncadd (%p1573_p8), [#allocation6], 4294966208  ;;  %p1574_p12 = pmov %p1573_p8 }
  0x84   : > { %p1575_p6 = pmov %p1573_p8 }
  0x85   : > { %1200 = dma.done.wait (%p1574_p12), [#allocation9], 4096  }
  0x86   : > { %1202 = vsyncadd (%p1575_p6), [#allocation9], 4294963200  ;;  %v1231_v0 = vmov 0.0   ;;  %v263_v1 = vld [vmem:[#allocation5 + $0x8] sm:$0xff]  ;;  %v265_v2 = vld [vmem:[#allocation5 + $0x18] sm:$0xff]  ;;  %vm270_vm0 = vcmask 261120  }
  0x87   : > { %341 = vmatprep.mubr.f32.mxu0 %v1231_v0  ;;  %v262_v3 = vld [vmem:[#allocation5] sm:$0xff]  ;;  %v892_v4 = vpack.c.bf16 %v265_v2, %v263_v1  ;;  %v264_v5 = vld [vmem:[#allocation5 + $0x10] sm:$0xff]  ;;  %v267_v6 = vld [vmem:[#allocation5 + $0x28] sm:$0xff]  ;;  %vm465_vm1 = vcmask 64544   ;;  %vm355_vm2 = vcmask 31744   ;;  %s1232_s21 = smov 124  }
  0x88   : > { %v269_v7 = vld [vmem:[#allocation5 + $0x38] sm:$0xff]  ;;  %v894_v8 = vpack.c.bf16 %v264_v5, %v262_v3  ;;  %v266_v10 = vld [vmem:[#allocation5 + $0x20] sm:$0xff]  ;;  %v268_v11 = vld [vmem:[#allocation5 + $0x30] sm:$0xff]  ;;  %vm384_vm3 = vcmask 1043456   ;;  %s257_s23 = scalar_lea.vmem [#allocation10], %s818_s12  ;;  %s837_s10 = sshll.u32 %s1282_s19, 8 }
  0x89   : > { %v896_v9 = vpack.c.bf16 %v269_v7, %v267_v6  ;;  %893 = vmatprep.subr.bf16.mxu0 %v892_v4  ;;  %v898_v12 = vpack.c.bf16 %v268_v11, %v266_v10  ;;  %v260_v13 = vld [vmem:[%s221_s7] sm:$0xff]  ;;  %v261_v14 = vld [vmem:[%s221_s7 + $0x8] sm:$0xff]  ;;  %s706_s28 = sshll.u32 %s257_s23, 4  ;;  %s1511_s8 = scalar_lea.hbm %s1558_s4, %s837_s10  ;;  %s1506_s28 = int_to_ptr.vmem [resolvable:$true] %s706_s28 }
  0x8a   : > { %895 = vmatpush1.bf16.msra.mxu0 %v894_v8  ;;  %v354_v45 = vld [vmem:[#allocation7] sm:$0xf]  ;;  %v599_v60 = vld [vmem:[#allocation8 + $0x80] sm:$0xff]  ;;  %v600_v61 = vld [vmem:[#allocation8 + $0x88] sm:$0xff]  ;;  %s693_s30 = scalar_lea.sflag [#allocation4], %s1459_s9  ;;  %s1147_s24 = scalar_lea.vmem %s1506_s28, 256 }
  0x8b   : > { %897 = vmatprep.subr.bf16.mxu0 %v896_v9  ;;  %v583_v62 = vld [vmem:[#allocation8] sm:$0xff]  ;;  %v900_v63 = vpack.c.bf16 %v600_v61, %v599_v60  ;;  %v601_v1 = vld [vmem:[#allocation8 + $0x90] sm:$0xff]  ;;  %v602_v2 = vld [vmem:[#allocation8 + $0x98] sm:$0xff]  ;;  %p1148_p0 = scmp.ne.s32.totalorder %s1506_s28, %s1147_s24  ;;  %s1233_s19 = smov [#allocation10]  }
  0x8c   : > { %v904_v4 = vpack.c.bf16 %v602_v2, %v601_v1  ;;  %v585_v5 = vld [vmem:[#allocation8 + $0x10] sm:$0xff]  ;;  %v586_v6 = vld [vmem:[#allocation8 + $0x18] sm:$0xff]  ;;  %v603_v7 = vld [vmem:[#allocation8 + $0xa0] sm:$0xff]  ;;  %s1151_s14 = sshll.u32 %s1233_s19, 4  ;;  %s1152_s14 = int_to_ptr.vmem [resolvable:$false] %s1151_s14 }
  0x8d   : > { %901 = vmatprep.subr.bf16.mxu1 %v900_v63  ;;  %v604_v8 = vld [vmem:[#allocation8 + $0xa8] sm:$0xff]  ;;  %v906_v9 = vpack.c.bf16 %v586_v6, %v585_v5  ;;  %v587_v11 = vld [vmem:[#allocation8 + $0x20] sm:$0xff]  ;;  %p1149_p3 = pnand %p1148_p0, %p1408_p5  ;;  %s1153_s27 = scalar_lea.vmem %s1152_s14, 512 }
  0x8e   : > { %899 = vmatpush1.bf16.msra.mxu0 %v898_v12  ;;  %v908_v10 = vpack.c.bf16 %v604_v8, %v603_v7  ;;  %v588_v12 = vld [vmem:[#allocation8 + $0x28] sm:$0xff]  ;;  %p1154_p11 = scmp.lt.s32.totalorder %s1506_s28, %s1152_s14  ;;  %p1155_p2 = scmp.lt.s32.totalorder %s1153_s27, %s1147_s24 }
  0x8f   : > { %882 = vmatprep.subr.msk.mxu0 %vm384_vm3, %v354_v45  ;;  %p1150_p7 = pneg %p1149_p3 }
  0x90   : > { %p1156_p1 = por %p1155_p2, %p1154_p11 }
  0x91   : > { %823 = vmatmul.mubr.msk.f32.vlgmr.msra.gmra.mrb[0].mxu0 %vm270_vm0, %v260_v13  ;;  %v605_v13 = vld [vmem:[#allocation8 + $0xb0] sm:$0xff] }
  0x92   : > { %347 = vmatprep.mubr.f32.mxu0 %v1231_v0  ;;  %883 = vmatpush3.msk.msra.mxu0 %vm384_vm3, %v354_v45  ;;  %v584_v0 = vld [vmem:[#allocation8 + $0x8] sm:$0xff]  ;;  %p1157_p4 = pnand %p1156_p1, %p1150_p7 }
  0x93   : > { %887 = vmatprep.subr.msk.mxu0 %vm384_vm3, %v354_v45  ;;  %v902_v3 = vpack.c.bf16 %v584_v0, %v583_v62 }
  0x95   : > { %824 = vmatmul.mubr.msk.f32.gmra.mrb[2].mxu0 %vm270_vm0, %v261_v14  ;;  %903 = vmatpush3.bf16.msra.mxu1 %v902_v3  ;;  %v606_v14 = vld [vmem:[#allocation8 + $0xb8] sm:$0xff] }
  0x96   : > { %905 = vmatprep.subr.bf16.mxu1 %v904_v4 }
  0x99   : > { %907 = vmatpush3.bf16.msra.mxu1 %v906_v9 }
  0x9a   : > { %909 = vmatprep.subr.bf16.mxu1 %v908_v10 }
 0x164   : > { %v1477_v15 = vpop.f32.mrb[0].mxu0 }
 0x165   : > { %v345_v16 = vpop.f32.mrb[1].mxu0 }
 0x166   : > { %v466_v17 = vsel %vm465_vm1, %v345_v16, -inf  ;;  %v356_v21 = vsel %vm355_vm2, %v345_v16, -inf }
 0x167   : > { %467 = vmax.xlane.f32.xlu0 %v466_v17  ;;  %v912_v17 = vpack.c.bf16 %v606_v14, %v605_v13 }
 0x168   : > { %v1479_v18 = vpop.f32.mrb[2].mxu0 }
 0x169   : > { %v351_v19 = vpop.f32.mrb[3].mxu0 }
 0x16a   : > { %v469_v20 = vsel %vm465_vm1, %v351_v19, -inf  ;;  %v359_v30 = vsel %vm355_vm2, %v351_v19, -inf }
 0x16b   : > { %470 = vmax.xlane.f32.xlu0 %v469_v20  ;;  %v590_v20 = vld [vmem:[#allocation8 + $0x38] sm:$0xff] }
 0x16f   : > { %357 = vmax.xlane.f32.xlu0 %v356_v21  ;;  %v607_v21 = vld [vmem:[#allocation8 + $0xc0] sm:$0xff] }
 0x1f4   : > { %v468_v22 = vpop.xlane.xlu0 %467 }
 0x1f5   : > { %v472_v23 = vsub.f32 %v345_v16, %v468_v22  ;;  %v608_v22 = vld [vmem:[#allocation8 + $0xc8] sm:$0xff] }
 0x1f7   : > { %v474_v24 = vmul.f32 1.442695, %v472_v23 }
 0x1f8   : > { %v471_v25 = vpop.xlane.xlu0 %470 }
 0x1f9   : > { %1017 = vpow2.f32 %v474_v24  ;;  %v473_v26 = vsub.f32 %v351_v19, %v471_v25  ;;  %v916_v24 = vpack.c.bf16 %v608_v22, %v607_v21  ;;  %v591_v25 = vld [vmem:[#allocation8 + $0x40] sm:$0xff] }
 0x1fb   : > { %v476_v27 = vmul.f32 1.442695, %v473_v26  ;;  %v592_v26 = vld [vmem:[#allocation8 + $0x48] sm:$0xff] }
 0x1fc   : > { %v358_v31 = vpop.xlane.xlu0 %357 }
 0x1fd   : > { %1019 = vpow2.f32 %v476_v27  ;;  %v362_v32 = vsub.f32 %v345_v16, %v358_v31  ;;  %v910_v16 = vpack.c.bf16 %v588_v12, %v587_v11  ;;  %v609_v27 = vld [vmem:[#allocation8 + $0xd0] sm:$0xff] }
 0x1fe   : > { %v593_v31 = vld [vmem:[#allocation8 + $0x50] sm:$0xff] }
 0x1ff   : > { %v364_v33 = vmul.f32 1.442695, %v362_v32  ;;  %911 = vmatpush3.bf16.msra.mxu1 %v910_v16  ;;  %v594_v32 = vld [vmem:[#allocation8 + $0x58] sm:$0xff] }
 0x200   : > { %913 = vmatprep.subr.bf16.mxu1 %v912_v17 }
 0x201   : > { %1021 = vpow2.f32 %v364_v33  ;;  %v611_v33 = vld [vmem:[#allocation8 + $0xe0] sm:$0xff] }
 0x203   : > { %v1018_v28 = vpop.eup %1017 }
 0x204   : > { %480 = vrot.lane.b32.xlu1 %v1018_v28, %s1232_s21 }
 0x207   : > { %v1020_v29 = vpop.eup %1019 }
 0x208   : > { %482 = vrot.lane.b32.xlu1 %v1020_v29, %s1232_s21 }
 0x20b   : > { %v1022_v38 = vpop.eup %1021 }
 0x20c   : > { %v368_v39 = vsel %vm355_vm2, %v1022_v38, 0.0 }
 0x22c   : > { %360 = vmax.xlane.f32.xlu1 %v359_v30 }
 0x276   : > { %v481_v34 = vpop.permute.xlu1 %480 }
 0x277   : > { %v486_v35 = vsel %vm355_vm2, %v481_v34, 0.0  ;;  %v612_v34 = vld [vmem:[#allocation8 + $0xe8] sm:$0xff] }
 0x278   : > { %487 = vadd.xlane.f32.xlu0 %v486_v35  ;;  %v922_v35 = vpack.c.bf16 %v594_v32, %v593_v31 }
 0x27a   : > { %v483_v36 = vpop.permute.xlu1 %482 }
 0x27b   : > { %v489_v37 = vsel %vm355_vm2, %v483_v36, 0.0  ;;  %v924_v36 = vpack.c.bf16 %v612_v34, %v611_v33 }
 0x27c   : > { %490 = vadd.xlane.f32.xlu0 %v489_v37  ;;  %v595_v37 = vld [vmem:[#allocation8 + $0x60] sm:$0xff] }
 0x280   : > { %369 = vadd.xlane.f32.xlu0 %v368_v39 }
 0x2b9   : > { %v361_v40 = vpop.xlane.xlu1 %360 }
 0x2ba   : > { %v363_v41 = vsub.f32 %v351_v19, %v361_v40  ;;  %v589_v19 = vld [vmem:[#allocation8 + $0x30] sm:$0xff] }
 0x2bb   : > { %v914_v23 = vpack.c.bf16 %v590_v20, %v589_v19  ;;  %v613_v40 = vld [vmem:[#allocation8 + $0xf0] sm:$0xff] }
 0x2bc   : > { %v366_v42 = vmul.f32 1.442695, %v363_v41  ;;  %v614_v41 = vld [vmem:[#allocation8 + $0xf8] sm:$0xff] }
 0x2bd   : > { %915 = vmatpush3.bf16.msra.mxu1 %v914_v23 }
 0x2be   : > { %1023 = vpow2.f32 %v366_v42  ;;  %917 = vmatprep.subr.bf16.mxu1 %v916_v24  ;;  %v928_v42 = vpack.c.bf16 %v614_v41, %v613_v40 }
 0x2c8   : > { %v1024_v43 = vpop.eup %1023 }
 0x2c9   : > { %v371_v44 = vsel %vm355_vm2, %v1024_v43, 0.0 }
 0x2ca   : > { %372 = vadd.xlane.f32.xlu0 %v371_v44  ;;  %v598_v44 = vld [vmem:[#allocation8 + $0x78] sm:$0xff] }
 0x305   : > { %v488_v46 = vpop.xlane.xlu0 %487 }
 0x306   : > { %1025 = vrcp.f32 %v488_v46 }
 0x309   : > { %v491_v47 = vpop.xlane.xlu0 %490 }
 0x30a   : > { %1027 = vrcp.f32 %v491_v47 }
 0x30d   : > { %v370_v48 = vpop.xlane.xlu0 %369 }
 0x30e   : > { %1029 = vrcp.f32 %v370_v48 }
 0x310   : > { %v1026_v49 = vpop.eup %1025 }
 0x311   : > { %v493_v50 = vmul.f32 %v1026_v49, %v1018_v28  ;;  %v610_v28 = vld [vmem:[#allocation8 + $0xd8] sm:$0xff] }
 0x312   : > { %v920_v30 = vpack.c.bf16 %v610_v28, %v609_v27 }
 0x313   : > { %498 = vrot.lane.b32.xlu0 %v493_v50, %s1232_s21 }
 0x314   : > { %v1028_v51 = vpop.eup %1027 }
 0x315   : > { %v495_v52 = vmul.f32 %v1028_v51, %v1020_v29  ;;  %v918_v29 = vpack.c.bf16 %v592_v26, %v591_v25 }
 0x317   : > { %500 = vrot.lane.b32.xlu1 %v495_v52, %s1232_s21  ;;  %919 = vmatpush3.bf16.msra.mxu1 %v918_v29 }
 0x318   : > { %v1030_v53 = vpop.eup %1029  ;;  %921 = vmatprep.subr.bf16.mxu1 %v920_v30 }
 0x319   : > { %v375_v54 = vmul.f32 %v1030_v53, %v1022_v38  ;;  %v596_v38 = vld [vmem:[#allocation8 + $0x68] sm:$0xff] }
 0x31a   : > { %v926_v39 = vpack.c.bf16 %v596_v38, %v595_v37 }
 0x31b   : > { %884 = vmatprep.mubr.msk.f32.mxu0 %vm355_vm2, %v375_v54  ;;  %923 = vmatpush3.bf16.msra.mxu1 %v922_v35 }
 0x31c   : > { %925 = vmatprep.subr.bf16.mxu1 %v924_v36 }
 0x31f   : > { %927 = vmatpush3.bf16.msra.mxu1 %v926_v39 }
 0x320   : > { %929 = vmatprep.subr.bf16.mxu1 %v928_v42 }
 0x357   : > { %v373_v55 = vpop.xlane.xlu0 %372 }
 0x358   : > { %1031 = vrcp.f32 %v373_v55 }
 0x362   : > { %v1032_v56 = vpop.eup %1031 }
 0x363   : > { %v377_v57 = vmul.f32 %v1032_v56, %v1024_v43  ;;  %v597_v43 = vld [vmem:[#allocation8 + $0x70] sm:$0xff] }
 0x365   : > { %885 = vmatmul.mubr.msk.f32.vlgmr.msra.gmra.mrb[4].mxu0 %vm355_vm2, %v377_v57 }
 0x366   : > { %888 = vmatpush3.msk.msra.mxu0 %vm384_vm3, %v354_v45  ;;  %v930_v45 = vpack.c.bf16 %v598_v44, %v597_v43 }
 0x368   : > { %931 = vmatpush3.bf16.msra.mxu1 %v930_v45 }
 0x385   : > { %v499_v58 = vpop.permute.xlu0 %498 }
 0x386   : > { %889 = vmatprep.mubr.msk.f32.mxu0 %vm355_vm2, %v499_v58 }
 0x389   : > { %v501_v59 = vpop.permute.xlu1 %500 }
 0x38a   : > { %890 = vmatmul.mubr.msk.f32.vlgmr.msra.gmra.mrb[6].mxu0 %vm355_vm2, %v501_v59 }
 0x438   : > { %v886_v46 = vpop.f32.mrb[4].mxu0 }
 0x439   : > { %v464_v47 = vmul.f32 %v886_v46, %v1479_v18  ;;  %v454_v48 = vpop.f32.mrb[5].mxu0 }
 0x43a   : > { %v463_v49 = vmul.f32 %v454_v48, %v1477_v15 }
 0x45d   : > { %v891_v50 = vpop.f32.mrb[6].mxu0 }
 0x45e   : > { %v582_v51 = vmul.f32 %v891_v50, %v1479_v18  ;;  %v572_v52 = vpop.f32.mrb[7].mxu0 }
 0x45f   : > { %v581_v53 = vmul.f32 %v572_v52, %v1477_v15 }
 0x461   : > { %679 = vmatprep.mubr.f32.mxu1 %v581_v53 }
 0x462   : > { %680 = vmatmul.mubr.f32.vlgmr.msra.gmra.mrb[0].mxu1 %v463_v49 }
 0x463   : > { %684 = vmatprep.mubr.f32.mxu1 %v582_v51 }
 0x466   : > { %685 = vmatmul.mubr.f32.gmra.mrb[2].mxu1 %v464_v47 }
 0x535   : > { %v876_v54 = vpop.f32.mrb[0].mxu1 }
 0x536   : > { %v877_v55 = vpop.f32.mrb[1].mxu1 }
 0x537   : > { %v878_v56 = vadd.f32 %v877_v55, %v876_v54 }
 0x539   : > { %690 = vst [vmem:[%s257_s23] sm:$0xff] %v878_v56  ;;  %v879_v15 = vpop.f32.mrb[2].mxu1 }
 0x53a   : > { %v880_v18 = vpop.f32.mrb[3].mxu1 }
 0x53b   : > { %v881_v57 = vadd.f32 %v880_v18, %v879_v15 }
 0x53d   : > { %691 = vst [vmem:[%s257_s23 + $0x8] sm:$0xff] %v881_v57 }
 0x53e   : > { %1160 = shalt.err (!%p1157_p4)
}
 0x53f   : > { %s1161_s5 = scalar_lea.hbm %s1511_s8, 256  ;;  %s1165_s20 = scalar_lea.hbm %s1558_s4, 1024 }
 0x540   : > { %p1162_p9 = scmp.ne.s32.totalorder %s1511_s8, %s1161_s5  ;;  %p1166_p8 = scmp.lt.u32.totalorder %s1511_s8, %s1558_s4 }
 0x541   : > { %p1167_p12 = scmp.lt.u32.totalorder %s1165_s20, %s1161_s5  ;;  %p1169_p0 = scmp.lt.u32.totalorder %s1161_s5, %s1511_s8 }
 0x542   : > { %p1163_p13 = pnand %p1162_p9, %p1408_p5 }
 0x543   : > { %p1168_p6 = por %p1167_p12, %p1166_p8 }
 0x544   : > { %p1164_p10 = pneg %p1163_p13 }
 0x545   : > { %p1170_p3 = por %p1169_p0, %p1168_p6 }
 0x547   : > { %p1171_p7 = pnand %p1170_p3, %p1164_p10 }
 0x549   : > { %1174 = shalt.err (!%p1171_p7)
}
 0x54a   : > { %s1234_s23 = smov 128   ;;  %s1235_s10 = smov 8  }
 0x54b   : > { %946 = dma.vmem_to_hbm [thread:$0]  (%p1408_p5), %s1506_s28, 256, %s1511_s8, %s693_s30, %s1234_s23, %s1234_s23, %s1235_s10  }
 0x54c PF: > { %p973_p11 = scmp.ge.s32.totalorder %s1221_s18, 2  ;;  %s721_s29 = sand.u32 1, %s1209_s15  }
 0x54d   : > { %p1576_p2 = scmp.ne.s32.totalorder %s1563_s22, 0  ;;  %s722_s6 = scalar_lea.sflag [#allocation4], %s721_s29 }
 0x54f   : > { %p963_p1 = pnand %p973_p11, %p1576_p2 }
 0x551   : > { %1204 = dma.done.wait (!%p963_p1), %s722_s6, 256  }
 0x552   : > { %1206 = vsyncadd (!%p963_p1), %s722_s6, 4294967040  ;;  %p19_p4 = scmp.ge.s32.totalorder %s1394_s11, 6   ;;  %s1577_s15 = smov %s1213_s16 }
 0x553   : > { %s1578_s16 = smov %s1217_s17  ;;  %s1579_s17 = smov %s1404_s13 }
 0x554   : > { %s1580_s18 = smov %s1394_s11  ;;  %21 = sbr.rel (!%p19_p4) target bundleno = 7 (0x7), region = 93 }
 0x55b   :  { %727 = vsyncpa [#allocation3], 1 }
 0x55c   :  { %729 = vsyncpa [#allocation3 + $0x1], 1 }
 0x55d   :  { %730 = vsyncpa [#allocation6], 1 }
 0x55e   :  { %731 = vsyncpa [#allocation9], 1 }
 0x55f   :  { %732 = vsyncpa [#allocation4], 1 }
 0x560   :  { %734 = vsyncpa [#allocation4 + $0x1], 1 }

</bundles_post_ra>
